<compile_context>
chip_gen: v7x
topology: tpu7x:2x2x1
jax: 0.10.0
libtpu: 0.0.40
codegen_flags: <defaults>
</compile_context>

<pallas_src>
import jax
import jax.numpy as jnp
from jax.experimental import pallas as pl
from jax.experimental.pallas import tpu as pltpu

# ----------------------- scaled-down ViT configuration -----------------------
IMG = 32             # real model: 384
PATCH = 8            # real model: 16
IN_CH = 3
HIDDEN = 128         # real model: 768   (multiple of 128 -> lane-dense)
LAYERS = 2           # real model: 12
HEADS = 4            # real model: 12
DH = HIDDEN // HEADS
MLP_HIDDEN = 4 * HIDDEN
NUM_CLASSES = 19
CLS_PAD = 128        # classifier padded to a lane-dense output width
GRID = IMG // PATCH
N_PATCH = GRID * GRID              # 16 patches per image
T_REAL = N_PATCH + 1               # 17 = CLS + patches
T_PAD = ((T_REAL + 7) // 8) * 8    # 24: pad tokens so row blocks tile on (8, 128)
LN_EPS = 1e-12                     # HF ViT layer_norm_eps
ATTN_SCALE = 1.0 / (DH ** 0.5)

F32 = jnp.float32
BF16 = jnp.bfloat16


# ------------------------------- small helpers -------------------------------
def _layernorm(x, g, b):
    mu = jnp.mean(x, axis=-1, keepdims=True)
    var = jnp.mean(jnp.square(x - mu), axis=-1, keepdims=True)
    return (x - mu) * jax.lax.rsqrt(var + LN_EPS) * g + b


def _shared_spec(shape):
    # Grid-invariant operand (weight / bias): constant index_map + a single VMEM
    # buffer (double-buffering a block that never changes buys nothing).
    assert len(shape) == 2
    return pl.BlockSpec(shape, lambda b: (0, 0), pipeline_mode=pl.Buffered(1))


def _mosaic_params(arrays, out_bytes, grid_rank=1):
    # Explicit scoped-VMEM budget: operand + output footprint, x2 for the
    # pipelined row blocks, plus headroom for compiler scratch.  Tiny at this
    # scaled config; must be re-derived per generation at real ViT-base size.
    footprint = sum(int(a.size) * a.dtype.itemsize for a in arrays) + out_bytes
    limit = int(min(max(2 * footprint + (8 << 20), 16 << 20), 96 << 20))
    kwargs = dict(vmem_limit_bytes=limit)
    if grid_rank:
        kwargs["dimension_semantics"] = ("parallel",) * grid_rank
    return pltpu.CompilerParams(**kwargs)


# ------------------------------ Pallas kernels ------------------------------
def _patch_embed_kernel(x_ref, w_ref, b_ref, o_ref):
    # Patch pixels -> hidden: bf16 MXU matmul, fp32 accumulate + bias.
    o_ref[...] = (
        jnp.dot(x_ref[...].astype(BF16), w_ref[...], preferred_element_type=F32)
        + b_ref[...]
    )


def _layer_kernel(h_ref, g1_ref, b1_ref, qkvw_ref, qkvb_ref, pw_ref, pb_ref,
                  g2_ref, b2_ref, w1_ref, w1b_ref, w2_ref, w2b_ref, o_ref):
    """One full pre-LN transformer block for one image (T_PAD x HIDDEN)."""
    h = h_ref[...]                                            # fp32 residual stream

    # (1) LayerNorm-before + fused QKV projection (bf16 MXU, fp32 accumulate).
    xn = _layernorm(h, g1_ref[...], b1_ref[...]).astype(BF16)
    qkv = jnp.dot(xn, qkvw_ref[...], preferred_element_type=F32) + qkvb_ref[...]

    # (2) Multi-head self-attention with the head split/merge fused in-kernel
    #     (no HBM relayout between QKV, attention and the output projection).
    key_valid = jax.lax.broadcasted_iota(jnp.int32, (T_PAD, T_PAD), 1) < T_REAL
    ctx_heads = []
    for hd in range(HEADS):
        lo = hd * DH
        q = (qkv[:, lo:lo + DH] * ATTN_SCALE).astype(BF16)     # scale q, not scores
        k = qkv[:, HIDDEN + lo:HIDDEN + lo + DH].astype(BF16)
        v = qkv[:, 2 * HIDDEN + lo:2 * HIDDEN + lo + DH].astype(BF16)
        s = jax.lax.dot_general(q, k, (((1,), (1,)), ((), ())),
                                preferred_element_type=F32)    # (T, T) = q @ k^T
        s = jnp.where(key_valid, s, -1e30)                     # mask padded keys
        s = s - jnp.max(s, axis=-1, keepdims=True)
        p = jnp.exp(s)
        p = p * pl.reciprocal(jnp.sum(p, axis=-1, keepdims=True), approx=True)
        ctx_heads.append(jnp.dot(p.astype(BF16), v, preferred_element_type=F32))
    ctx = jnp.concatenate(ctx_heads, axis=1).astype(BF16)      # (T, HIDDEN)

    # (3) Attention output projection + residual add.
    h1 = h + jnp.dot(ctx, pw_ref[...], preferred_element_type=F32) + pb_ref[...]

    # (4) LayerNorm-after + fc1 + GELU + fc2 + residual.
    # TODO(synk): HF ViT uses exact (erf) GELU; tanh-approximate GELU is used since
    #             erf lowering in Mosaic is not guaranteed (diff < ~2e-3).
    xn2 = _layernorm(h1, g2_ref[...], b2_ref[...]).astype(BF16)
    y = jnp.dot(xn2, w1_ref[...], preferred_element_type=F32) + w1b_ref[...]
    y = jax.nn.gelu(y, approximate=True).astype(BF16)
    o_ref[...] = h1 + jnp.dot(y, w2_ref[...], preferred_element_type=F32) + w2b_ref[...]


def _head_kernel(x_ref, g_ref, b_ref, w_ref, wb_ref, o_ref):
    # Final LayerNorm (CLS rows) + classifier (lane-dense 128-wide) + stable sigmoid.
    xn = _layernorm(x_ref[...], g_ref[...], b_ref[...]).astype(BF16)
    logits = jnp.dot(xn, w_ref[...], preferred_element_type=F32) + wb_ref[...]
    z = jnp.exp(-jnp.abs(logits))
    o_ref[...] = jnp.where(logits >= 0.0, 1.0 / (1.0 + z), z / (1.0 + z))


# --------------------------- pallas_call wrappers ---------------------------
def patch_embed(patches, w, b, batch):
    kd = patches.shape[1]
    b2 = b.reshape(1, -1)
    out_bytes = batch * N_PATCH * HIDDEN * 4
    return pl.pallas_call(
        _patch_embed_kernel,
        out_shape=jax.ShapeDtypeStruct((batch * N_PATCH, HIDDEN), F32),
        grid=(batch,),
        in_specs=[pl.BlockSpec((N_PATCH, kd), lambda i: (i, 0)),
                  _shared_spec((kd, HIDDEN)),
                  _shared_spec((1, HIDDEN))],
        out_specs=pl.BlockSpec((N_PATCH, HIDDEN), lambda i: (i, 0)),
        compiler_params=_mosaic_params([patches, w, b2], out_bytes),
    )(patches, w, b2)


def vit_layer(h, p, batch):
    args = (
        h,
        p["ln1_g"].reshape(1, -1), p["ln1_b"].reshape(1, -1),
        p["qkv_w"], p["qkv_b"].reshape(1, -1),
        p["proj_w"], p["proj_b"].reshape(1, -1),
        p["ln2_g"].reshape(1, -1), p["ln2_b"].reshape(1, -1),
        p["fc1_w"], p["fc1_b"].reshape(1, -1),
        p["fc2_w"], p["fc2_b"].reshape(1, -1),
    )
    row_spec = pl.BlockSpec((T_PAD, HIDDEN), lambda b: (b, 0))
    in_specs = [row_spec] + [_shared_spec(a.shape) for a in args[1:]]
    out_bytes = int(h.size) * 4
    return pl.pallas_call(
        _layer_kernel,
        out_shape=jax.ShapeDtypeStruct((batch * T_PAD, HIDDEN), F32),
        grid=(batch,),
        in_specs=in_specs,
        out_specs=row_spec,
        compiler_params=_mosaic_params(args, out_bytes),
    )(*args)


def head(cls_x, g, b, w, wb):
    # TODO(synk): single-step kernel by design -- the head is ~B x 128 x 128 of
    #             work; at real ViT-base-384 size grid over the batch instead.
    args = (cls_x, g.reshape(1, -1), b.reshape(1, -1), w, wb.reshape(1, -1))
    out_bytes = cls_x.shape[0] * CLS_PAD * 4
    return pl.pallas_call(
        _head_kernel,
        out_shape=jax.ShapeDtypeStruct((cls_x.shape[0], CLS_PAD), F32),
        compiler_params=_mosaic_params(args, out_bytes, grid_rank=0),
    )(*args)


# ------------------------------ parameter init ------------------------------
def init_params(key):
    kit = iter(jax.random.split(key, 64))

    def nrm(shape, scale=0.02, dtype=F32):
        return (jax.random.normal(next(kit), shape, F32) * scale).astype(dtype)

    cls_w = jnp.zeros((HIDDEN, CLS_PAD), F32)
    cls_w = cls_w.at[:, :NUM_CLASSES].set(nrm((HIDDEN, NUM_CLASSES)))

    p = {
        "patch_w": nrm((IN_CH * PATCH * PATCH, HIDDEN), dtype=BF16),
        "patch_b": jnp.zeros((HIDDEN,), F32),
        "cls_token": nrm((1, 1, HIDDEN)),
        "pos_embed": nrm((1, T_REAL, HIDDEN)),
        "final_ln_g": jnp.ones((HIDDEN,), F32),
        "final_ln_b": jnp.zeros((HIDDEN,), F32),
        # Classifier padded to 128 lane-dense columns; cols >= NUM_CLASSES are zero
        # and sliced off after the kernel.
        "cls_w": cls_w.astype(BF16),
        "cls_b": jnp.zeros((CLS_PAD,), F32),
    }
    layers = []
    for _ in range(LAYERS):
        layers.append(dict(
            ln1_g=jnp.ones((HIDDEN,), F32),
            ln1_b=jnp.zeros((HIDDEN,), F32),
            qkv_w=nrm((HIDDEN, 3 * HIDDEN), dtype=BF16),
            qkv_b=jnp.zeros((3 * HIDDEN,), F32),
            proj_w=nrm((HIDDEN, HIDDEN), dtype=BF16),
            proj_b=jnp.zeros((HIDDEN,), F32),
            ln2_g=jnp.ones((HIDDEN,), F32),
            ln2_b=jnp.zeros((HIDDEN,), F32),
            fc1_w=nrm((HIDDEN, MLP_HIDDEN), dtype=BF16),
            fc1_b=jnp.zeros((MLP_HIDDEN,), F32),
            fc2_w=nrm((MLP_HIDDEN, HIDDEN), dtype=BF16),
            fc2_b=jnp.zeros((HIDDEN,), F32),
        ))
    p["layers"] = layers
    return p


# --------------------------------- forward ---------------------------------
def _vit_forward(params, x):
    """x: (B, IN_CH, IMG, IMG) NCHW fp32 -> (sigmoid(logits): (B, 19), None)."""
    batch = x.shape[0]

    # Patch embedding: PATCHxPATCH stride-PATCH conv == patch-extract + matmul.
    patches = x.reshape(batch, IN_CH, GRID, PATCH, GRID, PATCH)
    patches = patches.transpose(0, 2, 4, 1, 3, 5)
    patches = patches.reshape(batch * N_PATCH, IN_CH * PATCH * PATCH)
    emb = patch_embed(patches, params["patch_w"], params["patch_b"], batch)
    emb = emb.reshape(batch, N_PATCH, HIDDEN)

    # CLS token + position embeddings, then zero-pad tokens 17 -> 24 (one-time,
    # tiny XLA glue; padded keys are masked inside the attention kernel so real
    # tokens are unaffected).
    cls = jnp.broadcast_to(params["cls_token"], (batch, 1, HIDDEN))
    tokens = jnp.concatenate([cls, emb], axis=1) + params["pos_embed"]   # (B, 17, H)
    h = jnp.pad(tokens, ((0, 0), (0, T_PAD - T_REAL), (0, 0)))           # (B, 24, H)
    h = h.reshape(batch * T_PAD, HIDDEN)

    # One fused pallas_call per transformer layer (grid over batch, parallel).
    for layer_params in params["layers"]:
        h = vit_layer(h, layer_params, batch)

    # Final LayerNorm + classifier + sigmoid on the CLS token only (LayerNorm is
    # per-token, so restricting it to the CLS rows is equivalent).
    cls_tok = h.reshape(batch, T_PAD, HIDDEN)[:, 0, :]
    probs = head(cls_tok, params["final_ln_g"], params["final_ln_b"],
                 params["cls_w"], params["cls_b"])
    return probs[:, :NUM_CLASSES], None


vit_forward = jax.jit(_vit_forward)


# ----------------------------------- main -----------------------------------
if __name__ == "__main__":
    key = jax.random.PRNGKey(0)
    pkey, xkey = jax.random.split(key)
    params = init_params(pkey)
    x = jax.random.normal(xkey, (2, IN_CH, IMG, IMG), jnp.float32)

    probs, aux = vit_forward(params, x)
    probs = jax.block_until_ready(probs)

    assert probs.shape == (2, NUM_CLASSES), probs.shape
    assert aux is None
    assert bool(jnp.all(jnp.isfinite(probs)))
    assert bool(jnp.all((probs >= 0.0) & (probs <= 1.0)))
    print("KERNEL_OK")
</pallas_src>

<mosaic_0001>
module attributes {stable_mosaic.version = 11 : i64} {
  func.func @_patch_embed_kernel(%arg0: i32, %arg1: memref<16x192xf32, #tpu.memory_space<vmem>>, %arg2: memref<192x128xbf16, #tpu.memory_space<vmem>>, %arg3: memref<1x128xf32, #tpu.memory_space<vmem>>, %arg4: memref<16x128xf32, #tpu.memory_space<vmem>>) attributes {dimension_semantics = [#tpu.dimension_semantics<parallel>], iteration_bounds = array<i64: 2>, scalar_prefetch = 0 : i64, scratch_operands = 0 : i64, tpu.core_type = #tpu.core_type<tc>, window_params = [{transform_indices = @transform_0, window_bounds = array<i64: 16, 192>}, {pipeline_mode = #tpu.pipeline_mode<synchronous>, transform_indices = @transform_1, window_bounds = array<i64: 192, 128>}, {pipeline_mode = #tpu.pipeline_mode<synchronous>, transform_indices = @transform_2, window_bounds = array<i64: 1, 128>}, {transform_indices = @transform_3, window_bounds = array<i64: 16, 128>}]} {
    %c0 = arith.constant 0 : index
    %c0_0 = arith.constant 0 : index
    %0 = vector.load %arg1[%c0, %c0_0] : memref<16x192xf32, #tpu.memory_space<vmem>>, vector<16x192xf32>
    %1 = arith.truncf %0 : vector<16x192xf32> to vector<16x192xbf16>
    %c0_1 = arith.constant 0 : index
    %c0_2 = arith.constant 0 : index
    %2 = vector.load %arg2[%c0_1, %c0_2] : memref<192x128xbf16, #tpu.memory_space<vmem>>, vector<192x128xbf16>
    %cst = arith.constant dense<0.000000e+00> : vector<16x128xf32>
    %3 = tpu.matmul %1, %2, %cst {dimension_numbers = #tpu.dot_dimension_numbers<[1], [0], [0], [1], [0, 0, 1, 1], [], []>} : vector<16x192xbf16>, vector<192x128xbf16>, vector<16x128xf32> -> vector<16x128xf32>
    %c0_3 = arith.constant 0 : index
    %c0_4 = arith.constant 0 : index
    %4 = vector.load %arg3[%c0_3, %c0_4] : memref<1x128xf32, #tpu.memory_space<vmem>>, vector<1x128xf32>
    %5 = vector.broadcast %4 : vector<1x128xf32> to vector<16x128xf32>
    %6 = arith.addf %3, %5 : vector<16x128xf32>
    %c0_5 = arith.constant 0 : index
    %c0_6 = arith.constant 0 : index
    %7 = vector.load %arg4[%c0_5, %c0_6] : memref<16x128xf32, #tpu.memory_space<vmem>>, vector<16x128xf32>
    tpu.vector_store %arg4[%c0_5, %c0_6], %6 {strides = array<i32>} : memref<16x128xf32, #tpu.memory_space<vmem>>, vector<16x128xf32>,
    return
  }
  func.func @transform_0(%arg0: i32) -> (i32, i32) {
    %c0_i32 = arith.constant 0 : i32
    %c0_i32_0 = arith.constant 0 : i32
    return %arg0, %c0_i32 : i32, i32
  }
  func.func @transform_1(%arg0: i32) -> (i32, i32) {
    %c0_i32 = arith.constant 0 : i32
    %c0_i32_0 = arith.constant 0 : i32
    %c0_i32_1 = arith.constant 0 : i32
    return %c0_i32, %c0_i32_0 : i32, i32
  }
  func.func @transform_2(%arg0: i32) -> (i32, i32) {
    %c0_i32 = arith.constant 0 : i32
    %c0_i32_0 = arith.constant 0 : i32
    %c0_i32_1 = arith.constant 0 : i32
    return %c0_i32, %c0_i32_0 : i32, i32
  }
  func.func @transform_3(%arg0: i32) -> (i32, i32) {
    %c0_i32 = arith.constant 0 : i32
    %c0_i32_0 = arith.constant 0 : i32
    return %arg0, %c0_i32 : i32, i32
  }
}

module attributes {stable_mosaic.version = 11 : i64} {
  func.func @_head_kernel(%arg0: memref<2x128xf32, #tpu.memory_space<vmem>>, %arg1: memref<1x128xf32, #tpu.memory_space<vmem>>, %arg2: memref<1x128xf32, #tpu.memory_space<vmem>>, %arg3: memref<128x128xbf16, #tpu.memory_space<vmem>>, %arg4: memref<1x128xf32, #tpu.memory_space<vmem>>, %arg5: memref<2x128xf32, #tpu.memory_space<vmem>>) attributes {dimension_semantics = [], scalar_prefetch = 0 : i64, scratch_operands = 0 : i64, tpu.core_type = #tpu.core_type<tc>} {
    %c0 = arith.constant 0 : index
    %c0_0 = arith.constant 0 : index
    %0 = vector.load %arg0[%c0, %c0_0] : memref<2x128xf32, #tpu.memory_space<vmem>>, vector<2x128xf32>
    %c0_1 = arith.constant 0 : index
    %c0_2 = arith.constant 0 : index
    %1 = vector.load %arg1[%c0_1, %c0_2] : memref<1x128xf32, #tpu.memory_space<vmem>>, vector<1x128xf32>
    %c0_3 = arith.constant 0 : index
    %c0_4 = arith.constant 0 : index
    %2 = vector.load %arg2[%c0_3, %c0_4] : memref<1x128xf32, #tpu.memory_space<vmem>>, vector<1x128xf32>
    %cst = arith.constant dense<0.000000e+00> : vector<2xf32>
    %3 = vector.multi_reduction <add>, %0, %cst [1] : vector<2x128xf32> to vector<2xf32>
    %4 = vector.shape_cast %3 : vector<2xf32> to vector<2x1xf32>
    %cst_5 = arith.constant 1.280000e+02 : f32
    %5 = vector.broadcast %cst_5 : f32 to vector<2x1xf32>
    %6 = arith.divf %4, %5 : vector<2x1xf32>
    %7 = vector.broadcast %6 : vector<2x1xf32> to vector<2x128xf32>
    %8 = arith.subf %0, %7 : vector<2x128xf32>
    %9 = arith.mulf %8, %8 : vector<2x128xf32>
    %cst_6 = arith.constant dense<0.000000e+00> : vector<2xf32>
    %10 = vector.multi_reduction <add>, %9, %cst_6 [1] : vector<2x128xf32> to vector<2xf32>
    %11 = vector.shape_cast %10 : vector<2xf32> to vector<2x1xf32>
    %cst_7 = arith.constant 1.280000e+02 : f32
    %12 = vector.broadcast %cst_7 : f32 to vector<2x1xf32>
    %13 = arith.divf %11, %12 : vector<2x1xf32>
    %14 = vector.broadcast %6 : vector<2x1xf32> to vector<2x128xf32>
    %15 = arith.subf %0, %14 : vector<2x128xf32>
    %cst_8 = arith.constant 9.99999996E-13 : f32
    %16 = vector.broadcast %cst_8 : f32 to vector<2x1xf32>
    %17 = arith.addf %13, %16 : vector<2x1xf32>
    %18 = math.rsqrt %17 : vector<2x1xf32>
    %19 = vector.broadcast %18 : vector<2x1xf32> to vector<2x128xf32>
    %20 = arith.mulf %15, %19 : vector<2x128xf32>
    %21 = vector.broadcast %1 : vector<1x128xf32> to vector<2x128xf32>
    %22 = arith.mulf %20, %21 : vector<2x128xf32>
    %23 = vector.broadcast %2 : vector<1x128xf32> to vector<2x128xf32>
    %24 = arith.addf %22, %23 : vector<2x128xf32>
    %25 = arith.truncf %24 : vector<2x128xf32> to vector<2x128xbf16>
    %c0_9 = arith.constant 0 : index
    %c0_10 = arith.constant 0 : index
    %26 = vector.load %arg3[%c0_9, %c0_10] : memref<128x128xbf16, #tpu.memory_space<vmem>>, vector<128x128xbf16>
    %cst_11 = arith.constant dense<0.000000e+00> : vector<2x128xf32>
    %27 = tpu.matmul %25, %26, %cst_11 {dimension_numbers = #tpu.dot_dimension_numbers<[1], [0], [0], [1], [0, 0, 1, 1], [], []>} : vector<2x128xbf16>, vector<128x128xbf16>, vector<2x128xf32> -> vector<2x128xf32>
    %c0_12 = arith.constant 0 : index
    %c0_13 = arith.constant 0 : index
    %28 = vector.load %arg4[%c0_12, %c0_13] : memref<1x128xf32, #tpu.memory_space<vmem>>, vector<1x128xf32>
    %29 = vector.broadcast %28 : vector<1x128xf32> to vector<2x128xf32>
    %30 = arith.addf %27, %29 : vector<2x128xf32>
    %31 = math.absf %30 : vector<2x128xf32>
    %cst_14 = arith.constant 0.000000e+00 : f32
    %32 = vector.broadcast %cst_14 : f32 to vector<2x128xf32>
    %33 = arith.subf %32, %31 : vector<2x128xf32>
    %34 = math.exp %33 : vector<2x128xf32>
    %cst_15 = arith.constant 0.000000e+00 : f32
    %35 = vector.broadcast %cst_15 : f32 to vector<2x128xf32>
    %36 = arith.cmpf oge, %30, %35 : vector<2x128xf32>
    %cst_16 = arith.constant 1.000000e+00 : f32
    %37 = vector.broadcast %cst_16 : f32 to vector<2x128xf32>
    %38 = arith.addf %37, %34 : vector<2x128xf32>
    %cst_17 = arith.constant 1.000000e+00 : f32
    %39 = vector.broadcast %cst_17 : f32 to vector<2x128xf32>
    %40 = arith.divf %39, %38 : vector<2x128xf32>
    %cst_18 = arith.constant 1.000000e+00 : f32
    %41 = vector.broadcast %cst_18 : f32 to vector<2x128xf32>
    %42 = arith.addf %41, %34 : vector<2x128xf32>
    %43 = arith.divf %34, %42 : vector<2x128xf32>
    %44 = arith.select %36, %40, %43 : vector<2x128xi1>, vector<2x128xf32>
    %c0_19 = arith.constant 0 : index
    %c0_20 = arith.constant 0 : index
    %45 = vector.load %arg5[%c0_19, %c0_20] : memref<2x128xf32, #tpu.memory_space<vmem>>, vector<2x128xf32>
    tpu.vector_store %arg5[%c0_19, %c0_20], %44 {strides = array<i32>} : memref<2x128xf32, #tpu.memory_space<vmem>>, vector<2x128xf32>,
    return
  }
}

module attributes {stable_mosaic.version = 11 : i64} {
  func.func @_layer_kernel(%arg0: i32, %arg1: memref<24x128xf32, #tpu.memory_space<vmem>>, %arg2: memref<1x128xf32, #tpu.memory_space<vmem>>, %arg3: memref<1x128xf32, #tpu.memory_space<vmem>>, %arg4: memref<128x384xbf16, #tpu.memory_space<vmem>>, %arg5: memref<1x384xf32, #tpu.memory_space<vmem>>, %arg6: memref<128x128xbf16, #tpu.memory_space<vmem>>, %arg7: memref<1x128xf32, #tpu.memory_space<vmem>>, %arg8: memref<1x128xf32, #tpu.memory_space<vmem>>, %arg9: memref<1x128xf32, #tpu.memory_space<vmem>>, %arg10: memref<128x512xbf16, #tpu.memory_space<vmem>>, %arg11: memref<1x512xf32, #tpu.memory_space<vmem>>, %arg12: memref<512x128xbf16, #tpu.memory_space<vmem>>, %arg13: memref<1x128xf32, #tpu.memory_space<vmem>>, %arg14: memref<24x128xf32, #tpu.memory_space<vmem>>) attributes {dimension_semantics = [#tpu.dimension_semantics<parallel>], iteration_bounds = array<i64: 2>, scalar_prefetch = 0 : i64, scratch_operands = 0 : i64, tpu.core_type = #tpu.core_type<tc>, window_params = [{transform_indices = @transform_0, window_bounds = array<i64: 24, 128>}, {pipeline_mode = #tpu.pipeline_mode<synchronous>, transform_indices = @transform_1, window_bounds = array<i64: 1, 128>}, {pipeline_mode = #tpu.pipeline_mode<synchronous>, transform_indices = @transform_2, window_bounds = array<i64: 1, 128>}, {pipeline_mode = #tpu.pipeline_mode<synchronous>, transform_indices = @transform_3, window_bounds = array<i64: 128, 384>}, {pipeline_mode = #tpu.pipeline_mode<synchronous>, transform_indices = @transform_4, window_bounds = array<i64: 1, 384>}, {pipeline_mode = #tpu.pipeline_mode<synchronous>, transform_indices = @transform_5, window_bounds = array<i64: 128, 128>}, {pipeline_mode = #tpu.pipeline_mode<synchronous>, transform_indices = @transform_6, window_bounds = array<i64: 1, 128>}, {pipeline_mode = #tpu.pipeline_mode<synchronous>, transform_indices = @transform_7, window_bounds = array<i64: 1, 128>}, {pipeline_mode = #tpu.pipeline_mode<synchronous>, transform_indices = @transform_8, window_bounds = array<i64: 1, 128>}, {pipeline_mode = #tpu.pipeline_mode<synchronous>, transform_indices = @transform_9, window_bounds = array<i64: 128, 512>}, {pipeline_mode = #tpu.pipeline_mode<synchronous>, transform_indices = @transform_10, window_bounds = array<i64: 1, 512>}, {pipeline_mode = #tpu.pipeline_mode<synchronous>, transform_indices = @transform_11, window_bounds = array<i64: 512, 128>}, {pipeline_mode = #tpu.pipeline_mode<synchronous>, transform_indices = @transform_12, window_bounds = array<i64: 1, 128>}, {transform_indices = @transform_13, window_bounds = array<i64: 24, 128>}]} {
    %c0 = arith.constant 0 : index
    %c0_0 = arith.constant 0 : index
    %0 = vector.load %arg1[%c0, %c0_0] : memref<24x128xf32, #tpu.memory_space<vmem>>, vector<24x128xf32>
    %c0_1 = arith.constant 0 : index
    %c0_2 = arith.constant 0 : index
    %1 = vector.load %arg2[%c0_1, %c0_2] : memref<1x128xf32, #tpu.memory_space<vmem>>, vector<1x128xf32>
    %c0_3 = arith.constant 0 : index
    %c0_4 = arith.constant 0 : index
    %2 = vector.load %arg3[%c0_3, %c0_4] : memref<1x128xf32, #tpu.memory_space<vmem>>, vector<1x128xf32>
    %cst = arith.constant dense<0.000000e+00> : vector<24xf32>
    %3 = vector.multi_reduction <add>, %0, %cst [1] : vector<24x128xf32> to vector<24xf32>
    %4 = vector.shape_cast %3 : vector<24xf32> to vector<24x1xf32>
    %cst_5 = arith.constant 1.280000e+02 : f32
    %5 = vector.broadcast %cst_5 : f32 to vector<24x1xf32>
    %6 = arith.divf %4, %5 : vector<24x1xf32>
    %7 = vector.broadcast %6 : vector<24x1xf32> to vector<24x128xf32>
    %8 = arith.subf %0, %7 : vector<24x128xf32>
    %9 = arith.mulf %8, %8 : vector<24x128xf32>
    %cst_6 = arith.constant dense<0.000000e+00> : vector<24xf32>
    %10 = vector.multi_reduction <add>, %9, %cst_6 [1] : vector<24x128xf32> to vector<24xf32>
    %11 = vector.shape_cast %10 : vector<24xf32> to vector<24x1xf32>
    %cst_7 = arith.constant 1.280000e+02 : f32
    %12 = vector.broadcast %cst_7 : f32 to vector<24x1xf32>
    %13 = arith.divf %11, %12 : vector<24x1xf32>
    %14 = vector.broadcast %6 : vector<24x1xf32> to vector<24x128xf32>
    %15 = arith.subf %0, %14 : vector<24x128xf32>
    %cst_8 = arith.constant 9.99999996E-13 : f32
    %16 = vector.broadcast %cst_8 : f32 to vector<24x1xf32>
    %17 = arith.addf %13, %16 : vector<24x1xf32>
    %18 = math.rsqrt %17 : vector<24x1xf32>
    %19 = vector.broadcast %18 : vector<24x1xf32> to vector<24x128xf32>
    %20 = arith.mulf %15, %19 : vector<24x128xf32>
    %21 = vector.broadcast %1 : vector<1x128xf32> to vector<24x128xf32>
    %22 = arith.mulf %20, %21 : vector<24x128xf32>
    %23 = vector.broadcast %2 : vector<1x128xf32> to vector<24x128xf32>
    %24 = arith.addf %22, %23 : vector<24x128xf32>
    %25 = arith.truncf %24 : vector<24x128xf32> to vector<24x128xbf16>
    %c0_9 = arith.constant 0 : index
    %c0_10 = arith.constant 0 : index
    %26 = vector.load %arg4[%c0_9, %c0_10] : memref<128x384xbf16, #tpu.memory_space<vmem>>, vector<128x384xbf16>
    %cst_11 = arith.constant dense<0.000000e+00> : vector<24x384xf32>
    %27 = tpu.matmul %25, %26, %cst_11 {dimension_numbers = #tpu.dot_dimension_numbers<[1], [0], [0], [1], [0, 0, 1, 1], [], []>} : vector<24x128xbf16>, vector<128x384xbf16>, vector<24x384xf32> -> vector<24x384xf32>
    %c0_12 = arith.constant 0 : index
    %c0_13 = arith.constant 0 : index
    %28 = vector.load %arg5[%c0_12, %c0_13] : memref<1x384xf32, #tpu.memory_space<vmem>>, vector<1x384xf32>
    %29 = vector.broadcast %28 : vector<1x384xf32> to vector<24x384xf32>
    %30 = arith.addf %27, %29 : vector<24x384xf32>
    %31 = tpu.iota {dimensions = array<i32: 1>} : vector<24x24xi32>
    %c17_i32 = arith.constant 17 : i32
    %32 = vector.broadcast %c17_i32 : i32 to vector<24x24xi32>
    %33 = arith.cmpi slt, %31, %32 : vector<24x24xi32>
    %34 = vector.extract_strided_slice %30 {offsets = [0, 0], sizes = [24, 32], strides = [1, 1]} : vector<24x384xf32> to vector<24x32xf32>
    %cst_14 = arith.constant 0.176776692 : f32
    %35 = vector.broadcast %cst_14 : f32 to vector<24x32xf32>
    %36 = arith.mulf %34, %35 : vector<24x32xf32>
    %37 = arith.truncf %36 : vector<24x32xf32> to vector<24x32xbf16>
    %38 = vector.extract_strided_slice %30 {offsets = [0, 128], sizes = [24, 32], strides = [1, 1]} : vector<24x384xf32> to vector<24x32xf32>
    %39 = arith.truncf %38 : vector<24x32xf32> to vector<24x32xbf16>
    %40 = vector.extract_strided_slice %30 {offsets = [0, 256], sizes = [24, 32], strides = [1, 1]} : vector<24x384xf32> to vector<24x32xf32>
    %41 = arith.truncf %40 : vector<24x32xf32> to vector<24x32xbf16>
    %cst_15 = arith.constant dense<0.000000e+00> : vector<24x24xf32>
    %42 = tpu.matmul %37, %39, %cst_15 {dimension_numbers = #tpu.dot_dimension_numbers<[1], [1], [0], [0], [0, 0, 1, 0], [], []>} : vector<24x32xbf16>, vector<24x32xbf16>, vector<24x24xf32> -> vector<24x24xf32>
    %cst_16 = arith.constant -1.000000e+30 : f32
    %43 = vector.broadcast %cst_16 : f32 to vector<24x24xf32>
    %44 = arith.select %33, %42, %43 : vector<24x24xi1>, vector<24x24xf32>
    %cst_17 = arith.constant dense<0xFF800000> : vector<24xf32>
    %45 = vector.multi_reduction <maximumf>, %44, %cst_17 [1] : vector<24x24xf32> to vector<24xf32>
    %46 = vector.shape_cast %45 : vector<24xf32> to vector<24x1xf32>
    %47 = vector.broadcast %46 : vector<24x1xf32> to vector<24x24xf32>
    %48 = arith.subf %44, %47 : vector<24x24xf32>
    %49 = math.exp %48 : vector<24x24xf32>
    %cst_18 = arith.constant dense<0.000000e+00> : vector<24xf32>
    %50 = vector.multi_reduction <add>, %49, %cst_18 [1] : vector<24x24xf32> to vector<24xf32>
    %51 = vector.shape_cast %50 : vector<24xf32> to vector<24x1xf32>
    %52 = tpu.reciprocal %51 {approx = true} : vector<24x1xf32> -> vector<24x1xf32>
    %53 = vector.broadcast %52 : vector<24x1xf32> to vector<24x24xf32>
    %54 = arith.mulf %49, %53 : vector<24x24xf32>
    %55 = arith.truncf %54 : vector<24x24xf32> to vector<24x24xbf16>
    %cst_19 = arith.constant dense<0.000000e+00> : vector<24x32xf32>
    %56 = tpu.matmul %55, %41, %cst_19 {dimension_numbers = #tpu.dot_dimension_numbers<[1], [0], [0], [1], [0, 0, 1, 1], [], []>} : vector<24x24xbf16>, vector<24x32xbf16>, vector<24x32xf32> -> vector<24x32xf32>
    %57 = vector.extract_strided_slice %30 {offsets = [0, 32], sizes = [24, 32], strides = [1, 1]} : vector<24x384xf32> to vector<24x32xf32>
    %cst_20 = arith.constant 0.176776692 : f32
    %58 = vector.broadcast %cst_20 : f32 to vector<24x32xf32>
    %59 = arith.mulf %57, %58 : vector<24x32xf32>
    %60 = arith.truncf %59 : vector<24x32xf32> to vector<24x32xbf16>
    %61 = vector.extract_strided_slice %30 {offsets = [0, 160], sizes = [24, 32], strides = [1, 1]} : vector<24x384xf32> to vector<24x32xf32>
    %62 = arith.truncf %61 : vector<24x32xf32> to vector<24x32xbf16>
    %63 = vector.extract_strided_slice %30 {offsets = [0, 288], sizes = [24, 32], strides = [1, 1]} : vector<24x384xf32> to vector<24x32xf32>
    %64 = arith.truncf %63 : vector<24x32xf32> to vector<24x32xbf16>
    %cst_21 = arith.constant dense<0.000000e+00> : vector<24x24xf32>
    %65 = tpu.matmul %60, %62, %cst_21 {dimension_numbers = #tpu.dot_dimension_numbers<[1], [1], [0], [0], [0, 0, 1, 0], [], []>} : vector<24x32xbf16>, vector<24x32xbf16>, vector<24x24xf32> -> vector<24x24xf32>
    %cst_22 = arith.constant -1.000000e+30 : f32
    %66 = vector.broadcast %cst_22 : f32 to vector<24x24xf32>
    %67 = arith.select %33, %65, %66 : vector<24x24xi1>, vector<24x24xf32>
    %cst_23 = arith.constant dense<0xFF800000> : vector<24xf32>
    %68 = vector.multi_reduction <maximumf>, %67, %cst_23 [1] : vector<24x24xf32> to vector<24xf32>
    %69 = vector.shape_cast %68 : vector<24xf32> to vector<24x1xf32>
    %70 = vector.broadcast %69 : vector<24x1xf32> to vector<24x24xf32>
    %71 = arith.subf %67, %70 : vector<24x24xf32>
    %72 = math.exp %71 : vector<24x24xf32>
    %cst_24 = arith.constant dense<0.000000e+00> : vector<24xf32>
    %73 = vector.multi_reduction <add>, %72, %cst_24 [1] : vector<24x24xf32> to vector<24xf32>
    %74 = vector.shape_cast %73 : vector<24xf32> to vector<24x1xf32>
    %75 = tpu.reciprocal %74 {approx = true} : vector<24x1xf32> -> vector<24x1xf32>
    %76 = vector.broadcast %75 : vector<24x1xf32> to vector<24x24xf32>
    %77 = arith.mulf %72, %76 : vector<24x24xf32>
    %78 = arith.truncf %77 : vector<24x24xf32> to vector<24x24xbf16>
    %cst_25 = arith.constant dense<0.000000e+00> : vector<24x32xf32>
    %79 = tpu.matmul %78, %64, %cst_25 {dimension_numbers = #tpu.dot_dimension_numbers<[1], [0], [0], [1], [0, 0, 1, 1], [], []>} : vector<24x24xbf16>, vector<24x32xbf16>, vector<24x32xf32> -> vector<24x32xf32>
    %80 = vector.extract_strided_slice %30 {offsets = [0, 64], sizes = [24, 32], strides = [1, 1]} : vector<24x384xf32> to vector<24x32xf32>
    %cst_26 = arith.constant 0.176776692 : f32
    %81 = vector.broadcast %cst_26 : f32 to vector<24x32xf32>
    %82 = arith.mulf %80, %81 : vector<24x32xf32>
    %83 = arith.truncf %82 : vector<24x32xf32> to vector<24x32xbf16>
    %84 = vector.extract_strided_slice %30 {offsets = [0, 192], sizes = [24, 32], strides = [1, 1]} : vector<24x384xf32> to vector<24x32xf32>
    %85 = arith.truncf %84 : vector<24x32xf32> to vector<24x32xbf16>
    %86 = vector.extract_strided_slice %30 {offsets = [0, 320], sizes = [24, 32], strides = [1, 1]} : vector<24x384xf32> to vector<24x32xf32>
    %87 = arith.truncf %86 : vector<24x32xf32> to vector<24x32xbf16>
    %cst_27 = arith.constant dense<0.000000e+00> : vector<24x24xf32>
    %88 = tpu.matmul %83, %85, %cst_27 {dimension_numbers = #tpu.dot_dimension_numbers<[1], [1], [0], [0], [0, 0, 1, 0], [], []>} : vector<24x32xbf16>, vector<24x32xbf16>, vector<24x24xf32> -> vector<24x24xf32>
    %cst_28 = arith.constant -1.000000e+30 : f32
    %89 = vector.broadcast %cst_28 : f32 to vector<24x24xf32>
    %90 = arith.select %33, %88, %89 : vector<24x24xi1>, vector<24x24xf32>
    %cst_29 = arith.constant dense<0xFF800000> : vector<24xf32>
    %91 = vector.multi_reduction <maximumf>, %90, %cst_29 [1] : vector<24x24xf32> to vector<24xf32>
    %92 = vector.shape_cast %91 : vector<24xf32> to vector<24x1xf32>
    %93 = vector.broadcast %92 : vector<24x1xf32> to vector<24x24xf32>
    %94 = arith.subf %90, %93 : vector<24x24xf32>
    %95 = math.exp %94 : vector<24x24xf32>
    %cst_30 = arith.constant dense<0.000000e+00> : vector<24xf32>
    %96 = vector.multi_reduction <add>, %95, %cst_30 [1] : vector<24x24xf32> to vector<24xf32>
    %97 = vector.shape_cast %96 : vector<24xf32> to vector<24x1xf32>
    %98 = tpu.reciprocal %97 {approx = true} : vector<24x1xf32> -> vector<24x1xf32>
    %99 = vector.broadcast %98 : vector<24x1xf32> to vector<24x24xf32>
    %100 = arith.mulf %95, %99 : vector<24x24xf32>
    %101 = arith.truncf %100 : vector<24x24xf32> to vector<24x24xbf16>
    %cst_31 = arith.constant dense<0.000000e+00> : vector<24x32xf32>
    %102 = tpu.matmul %101, %87, %cst_31 {dimension_numbers = #tpu.dot_dimension_numbers<[1], [0], [0], [1], [0, 0, 1, 1], [], []>} : vector<24x24xbf16>, vector<24x32xbf16>, vector<24x32xf32> -> vector<24x32xf32>
    %103 = vector.extract_strided_slice %30 {offsets = [0, 96], sizes = [24, 32], strides = [1, 1]} : vector<24x384xf32> to vector<24x32xf32>
    %cst_32 = arith.constant 0.176776692 : f32
    %104 = vector.broadcast %cst_32 : f32 to vector<24x32xf32>
    %105 = arith.mulf %103, %104 : vector<24x32xf32>
    %106 = arith.truncf %105 : vector<24x32xf32> to vector<24x32xbf16>
    %107 = vector.extract_strided_slice %30 {offsets = [0, 224], sizes = [24, 32], strides = [1, 1]} : vector<24x384xf32> to vector<24x32xf32>
    %108 = arith.truncf %107 : vector<24x32xf32> to vector<24x32xbf16>
    %109 = vector.extract_strided_slice %30 {offsets = [0, 352], sizes = [24, 32], strides = [1, 1]} : vector<24x384xf32> to vector<24x32xf32>
    %110 = arith.truncf %109 : vector<24x32xf32> to vector<24x32xbf16>
    %cst_33 = arith.constant dense<0.000000e+00> : vector<24x24xf32>
    %111 = tpu.matmul %106, %108, %cst_33 {dimension_numbers = #tpu.dot_dimension_numbers<[1], [1], [0], [0], [0, 0, 1, 0], [], []>} : vector<24x32xbf16>, vector<24x32xbf16>, vector<24x24xf32> -> vector<24x24xf32>
    %cst_34 = arith.constant -1.000000e+30 : f32
    %112 = vector.broadcast %cst_34 : f32 to vector<24x24xf32>
    %113 = arith.select %33, %111, %112 : vector<24x24xi1>, vector<24x24xf32>
    %cst_35 = arith.constant dense<0xFF800000> : vector<24xf32>
    %114 = vector.multi_reduction <maximumf>, %113, %cst_35 [1] : vector<24x24xf32> to vector<24xf32>
    %115 = vector.shape_cast %114 : vector<24xf32> to vector<24x1xf32>
    %116 = vector.broadcast %115 : vector<24x1xf32> to vector<24x24xf32>
    %117 = arith.subf %113, %116 : vector<24x24xf32>
    %118 = math.exp %117 : vector<24x24xf32>
    %cst_36 = arith.constant dense<0.000000e+00> : vector<24xf32>
    %119 = vector.multi_reduction <add>, %118, %cst_36 [1] : vector<24x24xf32> to vector<24xf32>
    %120 = vector.shape_cast %119 : vector<24xf32> to vector<24x1xf32>
    %121 = tpu.reciprocal %120 {approx = true} : vector<24x1xf32> -> vector<24x1xf32>
    %122 = vector.broadcast %121 : vector<24x1xf32> to vector<24x24xf32>
    %123 = arith.mulf %118, %122 : vector<24x24xf32>
    %124 = arith.truncf %123 : vector<24x24xf32> to vector<24x24xbf16>
    %cst_37 = arith.constant dense<0.000000e+00> : vector<24x32xf32>
    %125 = tpu.matmul %124, %110, %cst_37 {dimension_numbers = #tpu.dot_dimension_numbers<[1], [0], [0], [1], [0, 0, 1, 1], [], []>} : vector<24x24xbf16>, vector<24x32xbf16>, vector<24x32xf32> -> vector<24x32xf32>
    %126 = tpu.concatenate %56, %79, %102, %125 in 1 : vector<24x32xf32>, vector<24x32xf32>, vector<24x32xf32>, vector<24x32xf32> -> vector<24x128xf32>
    %127 = arith.truncf %126 : vector<24x128xf32> to vector<24x128xbf16>
    %c0_38 = arith.constant 0 : index
    %c0_39 = arith.constant 0 : index
    %128 = vector.load %arg6[%c0_38, %c0_39] : memref<128x128xbf16, #tpu.memory_space<vmem>>, vector<128x128xbf16>
    %cst_40 = arith.constant dense<0.000000e+00> : vector<24x128xf32>
    %129 = tpu.matmul %127, %128, %cst_40 {dimension_numbers = #tpu.dot_dimension_numbers<[1], [0], [0], [1], [0, 0, 1, 1], [], []>} : vector<24x128xbf16>, vector<128x128xbf16>, vector<24x128xf32> -> vector<24x128xf32>
    %130 = arith.addf %0, %129 : vector<24x128xf32>
    %c0_41 = arith.constant 0 : index
    %c0_42 = arith.constant 0 : index
    %131 = vector.load %arg7[%c0_41, %c0_42] : memref<1x128xf32, #tpu.memory_space<vmem>>, vector<1x128xf32>
    %132 = vector.broadcast %131 : vector<1x128xf32> to vector<24x128xf32>
    %133 = arith.addf %130, %132 : vector<24x128xf32>
    %c0_43 = arith.constant 0 : index
    %c0_44 = arith.constant 0 : index
    %134 = vector.load %arg8[%c0_43, %c0_44] : memref<1x128xf32, #tpu.memory_space<vmem>>, vector<1x128xf32>
    %c0_45 = arith.constant 0 : index
    %c0_46 = arith.constant 0 : index
    %135 = vector.load %arg9[%c0_45, %c0_46] : memref<1x128xf32, #tpu.memory_space<vmem>>, vector<1x128xf32>
    %cst_47 = arith.constant dense<0.000000e+00> : vector<24xf32>
    %136 = vector.multi_reduction <add>, %133, %cst_47 [1] : vector<24x128xf32> to vector<24xf32>
    %137 = vector.shape_cast %136 : vector<24xf32> to vector<24x1xf32>
    %cst_48 = arith.constant 1.280000e+02 : f32
    %138 = vector.broadcast %cst_48 : f32 to vector<24x1xf32>
    %139 = arith.divf %137, %138 : vector<24x1xf32>
    %140 = vector.broadcast %139 : vector<24x1xf32> to vector<24x128xf32>
    %141 = arith.subf %133, %140 : vector<24x128xf32>
    %142 = arith.mulf %141, %141 : vector<24x128xf32>
    %cst_49 = arith.constant dense<0.000000e+00> : vector<24xf32>
    %143 = vector.multi_reduction <add>, %142, %cst_49 [1] : vector<24x128xf32> to vector<24xf32>
    %144 = vector.shape_cast %143 : vector<24xf32> to vector<24x1xf32>
    %cst_50 = arith.constant 1.280000e+02 : f32
    %145 = vector.broadcast %cst_50 : f32 to vector<24x1xf32>
    %146 = arith.divf %144, %145 : vector<24x1xf32>
    %147 = vector.broadcast %139 : vector<24x1xf32> to vector<24x128xf32>
    %148 = arith.subf %133, %147 : vector<24x128xf32>
    %cst_51 = arith.constant 9.99999996E-13 : f32
    %149 = vector.broadcast %cst_51 : f32 to vector<24x1xf32>
    %150 = arith.addf %146, %149 : vector<24x1xf32>
    %151 = math.rsqrt %150 : vector<24x1xf32>
    %152 = vector.broadcast %151 : vector<24x1xf32> to vector<24x128xf32>
    %153 = arith.mulf %148, %152 : vector<24x128xf32>
    %154 = vector.broadcast %134 : vector<1x128xf32> to vector<24x128xf32>
    %155 = arith.mulf %153, %154 : vector<24x128xf32>
    %156 = vector.broadcast %135 : vector<1x128xf32> to vector<24x128xf32>
    %157 = arith.addf %155, %156 : vector<24x128xf32>
    %158 = arith.truncf %157 : vector<24x128xf32> to vector<24x128xbf16>
    %c0_52 = arith.constant 0 : index
    %c0_53 = arith.constant 0 : index
    %159 = vector.load %arg10[%c0_52, %c0_53] : memref<128x512xbf16, #tpu.memory_space<vmem>>, vector<128x512xbf16>
    %cst_54 = arith.constant dense<0.000000e+00> : vector<24x512xf32>
    %160 = tpu.matmul %158, %159, %cst_54 {dimension_numbers = #tpu.dot_dimension_numbers<[1], [0], [0], [1], [0, 0, 1, 1], [], []>} : vector<24x128xbf16>, vector<128x512xbf16>, vector<24x512xf32> -> vector<24x512xf32>
    %c0_55 = arith.constant 0 : index
    %c0_56 = arith.constant 0 : index
    %161 = vector.load %arg11[%c0_55, %c0_56] : memref<1x512xf32, #tpu.memory_space<vmem>>, vector<1x512xf32>
    %162 = vector.broadcast %161 : vector<1x512xf32> to vector<24x512xf32>
    %163 = arith.addf %160, %162 : vector<24x512xf32>
    %164 = arith.mulf %163, %163 : vector<24x512xf32>
    %165 = arith.mulf %163, %164 : vector<24x512xf32>
    %cst_57 = arith.constant 4.471500e-02 : f32
    %166 = vector.broadcast %cst_57 : f32 to vector<24x512xf32>
    %167 = arith.mulf %166, %165 : vector<24x512xf32>
    %168 = arith.addf %163, %167 : vector<24x512xf32>
    %cst_58 = arith.constant 0.797884583 : f32
    %169 = vector.broadcast %cst_58 : f32 to vector<24x512xf32>
    %170 = arith.mulf %169, %168 : vector<24x512xf32>
    %171 = math.tanh %170 : vector<24x512xf32>
    %cst_59 = arith.constant 1.000000e+00 : f32
    %172 = vector.broadcast %cst_59 : f32 to vector<24x512xf32>
    %173 = arith.addf %172, %171 : vector<24x512xf32>
    %cst_60 = arith.constant 5.000000e-01 : f32
    %174 = vector.broadcast %cst_60 : f32 to vector<24x512xf32>
    %175 = arith.mulf %174, %173 : vector<24x512xf32>
    %176 = arith.mulf %163, %175 : vector<24x512xf32>
    %177 = arith.truncf %176 : vector<24x512xf32> to vector<24x512xbf16>
    %c0_61 = arith.constant 0 : index
    %c0_62 = arith.constant 0 : index
    %178 = vector.load %arg12[%c0_61, %c0_62] : memref<512x128xbf16, #tpu.memory_space<vmem>>, vector<512x128xbf16>
    %cst_63 = arith.constant dense<0.000000e+00> : vector<24x128xf32>
    %179 = tpu.matmul %177, %178, %cst_63 {dimension_numbers = #tpu.dot_dimension_numbers<[1], [0], [0], [1], [0, 0, 1, 1], [], []>} : vector<24x512xbf16>, vector<512x128xbf16>, vector<24x128xf32> -> vector<24x128xf32>
    %180 = arith.addf %133, %179 : vector<24x128xf32>
    %c0_64 = arith.constant 0 : index
    %c0_65 = arith.constant 0 : index
    %181 = vector.load %arg13[%c0_64, %c0_65] : memref<1x128xf32, #tpu.memory_space<vmem>>, vector<1x128xf32>
    %182 = vector.broadcast %181 : vector<1x128xf32> to vector<24x128xf32>
    %183 = arith.addf %180, %182 : vector<24x128xf32>
    %c0_66 = arith.constant 0 : index
    %c0_67 = arith.constant 0 : index
    %184 = vector.load %arg14[%c0_66, %c0_67] : memref<24x128xf32, #tpu.memory_space<vmem>>, vector<24x128xf32>
    tpu.vector_store %arg14[%c0_66, %c0_67], %183 {strides = array<i32>} : memref<24x128xf32, #tpu.memory_space<vmem>>, vector<24x128xf32>,
    return
  }
  func.func @transform_0(%arg0: i32) -> (i32, i32) {
    %c0_i32 = arith.constant 0 : i32
    %c0_i32_0 = arith.constant 0 : i32
    return %arg0, %c0_i32 : i32, i32
  }
  func.func @transform_1(%arg0: i32) -> (i32, i32) {
    %c0_i32 = arith.constant 0 : i32
    %c0_i32_0 = arith.constant 0 : i32
    %c0_i32_1 = arith.constant 0 : i32
    return %c0_i32, %c0_i32_0 : i32, i32
  }
  func.func @transform_2(%arg0: i32) -> (i32, i32) {
    %c0_i32 = arith.constant 0 : i32
    %c0_i32_0 = arith.constant 0 : i32
    %c0_i32_1 = arith.constant 0 : i32
    return %c0_i32, %c0_i32_0 : i32, i32
  }
  func.func @transform_3(%arg0: i32) -> (i32, i32) {
    %c0_i32 = arith.constant 0 : i32
    %c0_i32_0 = arith.constant 0 : i32
    %c0_i32_1 = arith.constant 0 : i32
    return %c0_i32, %c0_i32_0 : i32, i32
  }
  func.func @transform_4(%arg0: i32) -> (i32, i32) {
    %c0_i32 = arith.constant 0 : i32
    %c0_i32_0 = arith.constant 0 : i32
    %c0_i32_1 = arith.constant 0 : i32
    return %c0_i32, %c0_i32_0 : i32, i32
  }
  func.func @transform_5(%arg0: i32) -> (i32, i32) {
    %c0_i32 = arith.constant 0 : i32
    %c0_i32_0 = arith.constant 0 : i32
    %c0_i32_1 = arith.constant 0 : i32
    return %c0_i32, %c0_i32_0 : i32, i32
  }
  func.func @transform_6(%arg0: i32) -> (i32, i32) {
    %c0_i32 = arith.constant 0 : i32
    %c0_i32_0 = arith.constant 0 : i32
    %c0_i32_1 = arith.constant 0 : i32
    return %c0_i32, %c0_i32_0 : i32, i32
  }
  func.func @transform_7(%arg0: i32) -> (i32, i32) {
    %c0_i32 = arith.constant 0 : i32
    %c0_i32_0 = arith.constant 0 : i32
    %c0_i32_1 = arith.constant 0 : i32
    return %c0_i32, %c0_i32_0 : i32, i32
  }
  func.func @transform_8(%arg0: i32) -> (i32, i32) {
    %c0_i32 = arith.constant 0 : i32
    %c0_i32_0 = arith.constant 0 : i32
    %c0_i32_1 = arith.constant 0 : i32
    return %c0_i32, %c0_i32_0 : i32, i32
  }
  func.func @transform_9(%arg0: i32) -> (i32, i32) {
    %c0_i32 = arith.constant 0 : i32
    %c0_i32_0 = arith.constant 0 : i32
    %c0_i32_1 = arith.constant 0 : i32
    return %c0_i32, %c0_i32_0 : i32, i32
  }
  func.func @transform_10(%arg0: i32) -> (i32, i32) {
    %c0_i32 = arith.constant 0 : i32
    %c0_i32_0 = arith.constant 0 : i32
    %c0_i32_1 = arith.constant 0 : i32
    return %c0_i32, %c0_i32_0 : i32, i32
  }
  func.func @transform_11(%arg0: i32) -> (i32, i32) {
    %c0_i32 = arith.constant 0 : i32
    %c0_i32_0 = arith.constant 0 : i32
    %c0_i32_1 = arith.constant 0 : i32
    return %c0_i32, %c0_i32_0 : i32, i32
  }
  func.func @transform_12(%arg0: i32) -> (i32, i32) {
    %c0_i32 = arith.constant 0 : i32
    %c0_i32_0 = arith.constant 0 : i32
    %c0_i32_1 = arith.constant 0 : i32
    return %c0_i32, %c0_i32_0 : i32, i32
  }
  func.func @transform_13(%arg0: i32) -> (i32, i32) {
    %c0_i32 = arith.constant 0 : i32
    %c0_i32_0 = arith.constant 0 : i32
    return %arg0, %c0_i32 : i32, i32
  }
}

</mosaic_0001>

<bundles_post_ra>
// kernel: _vit_forward.4
= control target key start
LH: loop header
LB: loop body
LE: loop exit
PB: predicated region body
PF: predicated region fallthrough
CT: control target
= control target key end

     0   :  { %s467_s12 = smov 0   ;;  %s533_s0 = inlined_call_operand.vmem [shape: f32[32,192], index: 0, kind: input, shape index: {}]   ;;  %s534_s1 = inlined_call_operand.vmem [shape: bf16[192,128], index: 1, kind: input, shape index: {}]   ;;  %s535_s2 = inlined_call_operand.vmem [shape: f32[1,128], index: 2, kind: input, shape index: {}]   ;;  %s536_s3 = inlined_call_operand.vmem [shape: f32[32,128], index: 3, kind: output, shape index: {}]  }
   0x1 LB: > { %s390_s13 = sadd.s32 4294967295, %s444_s12   ;;  %p394_p0 = scmp.ge.s32.totalorder %s444_s12, 1  ;;  %s444_s12 = sphi %s467_s12, %s13_s12  }
   0x2   : > { %p139_p1 = scmp.lt.s32.totalorder %s444_s12, 3 }
   0x4   : > { %p140_p2 = pnand %p394_p0, %p139_p1 }
   0x5   : > { %v426_v0 = vld [vmem:[%s534_s1] sm:$0xff] (!%p140_p2)   ;;  %v446_v1 = vmov (!%p140_p2), 0   ;;  %s395_s16 = sshll.u32 (!%p140_p2), %s390_s13, 1  ;;  %v427_v2 = vld [vmem:[%s534_s1 + $0x8] sm:$0xff] (!%p140_p2)   ;;  %v428_v3 = vld [vmem:[%s534_s1 + $0x10] sm:$0xff] (!%p140_p2)   ;;  %vm287_vm0 = vcmask (!%p140_p2), 523264  }
   0x6   : > { %143 = sbr.rel (%p140_p2) target bundleno = 271 (0x10f), region = 32  ;;  %291 = vmatprep.subr.bf16.mxu0 (!%p140_p2), %v446_v1  ;;  %p165_p3 = scmp.lt.s32.totalorder (!%p140_p2), %s395_s16, 3  ;;  %v429_v4 = vld [vmem:[%s534_s1 + $0x18] sm:$0xff] (!%p140_p2)   ;;  %v430_v8 = vld [vmem:[%s534_s1 + $0x20] sm:$0xff] (!%p140_p2)   ;;  %v431_v9 = vld [vmem:[%s534_s1 + $0x28] sm:$0xff] (!%p140_p2)  }
   0x7   : > { %292 = vmatpush1.bf16.msra.mxu0 (!%p140_p2), %v426_v0  ;;  %v432_v10 = vld [vmem:[%s534_s1 + $0x30] sm:$0xff] (!%p140_p2)   ;;  %v433_v11 = vld [vmem:[%s534_s1 + $0x38] sm:$0xff] (!%p140_p2)   ;;  %v434_v12 = vld [vmem:[%s534_s1 + $0x40] sm:$0xff] (!%p140_p2)  }
   0x8   : > { %293 = vmatprep.subr.bf16.mxu0 (!%p140_p2), %v446_v1  ;;  %v435_v13 = vld [vmem:[%s534_s1 + $0x48] sm:$0xff] (!%p140_p2)   ;;  %v436_v14 = vld [vmem:[%s534_s1 + $0x50] sm:$0xff] (!%p140_p2)   ;;  %v437_v15 = vld [vmem:[%s534_s1 + $0x58] sm:$0xff] (!%p140_p2)  }
   0x9   : > { %v400_v19 = vld [vmem:[%s535_s2] ss:$0 sm:$0xff] (!%p140_p2) }
   0xb   : > { %294 = vmatpush1.bf16.msra.mxu0 (!%p140_p2), %v427_v2 }
   0xc   : > { %295 = vmatprep.subr.bf16.mxu0 (!%p140_p2), %v446_v1 }
   0xd   : > { %s538_s16 = smov (!%p165_p3, %s395_s16), 3 }
   0xe   : > { %s416_s21 = sshll.u32 %s538_s16, 4  ;;  %s399_s18 = sshll.u32 %s538_s16, 3 }
   0xf   : > { %s490_s24 = scalar_lea.vmem %s533_s0, %s416_s21  ;;  %296 = vmatpush1.bf16.msra.mxu0 %v428_v3  ;;  %s175_s23 = scalar_lea.vmem %s536_s3, %s399_s18 }
  0x10   : > { %297 = vmatprep.subr.bf16.mxu0 %v446_v1  ;;  %v179_v5 = vld [vmem:[%s490_s24 + $0x8] sm:$0xff]  ;;  %v181_v6 = vld [vmem:[%s490_s24 + $0x18] sm:$0xff]  ;;  %v178_v16 = vld [vmem:[%s490_s24] sm:$0xff] }
  0x11   : > { %v183_v7 = vpack.c.bf16 %v181_v6, %v179_v5  ;;  %v180_v17 = vld [vmem:[%s490_s24 + $0x10] sm:$0xff] }
  0x12   : > { %v182_v18 = vpack.c.bf16 %v180_v17, %v178_v16 }
  0x13   : > { %298 = vmatpush1.bf16.msra.mxu0 %v429_v4  ;;  %413 = vmatprep.mubr.msk.bf16.mxu0 %vm287_vm0, %v183_v7 }
  0x14   : > { %299 = vmatprep.subr.bf16.mxu0 %v446_v1 }
  0x17   : > { %300 = vmatpush1.bf16.msra.mxu0 %v430_v8 }
  0x18   : > { %301 = vmatprep.subr.bf16.mxu0 %v446_v1 }
  0x1b   : > { %302 = vmatpush1.bf16.msra.mxu0 %v431_v9 }
  0x1c   : > { %303 = vmatprep.subr.bf16.mxu0 %v446_v1 }
  0x1f   : > { %304 = vmatpush1.bf16.msra.mxu0 %v432_v10 }
  0x20   : > { %305 = vmatprep.subr.bf16.mxu0 %v446_v1 }
  0x23   : > { %306 = vmatpush1.bf16.msra.mxu0 %v433_v11 }
  0x24   : > { %307 = vmatprep.subr.bf16.mxu0 %v446_v1 }
  0x27   : > { %308 = vmatpush1.bf16.msra.mxu0 %v434_v12 }
  0x28   : > { %309 = vmatprep.subr.bf16.mxu0 %v446_v1 }
  0x2b   : > { %310 = vmatpush1.bf16.msra.mxu0 %v435_v13 }
  0x2c   : > { %311 = vmatprep.subr.bf16.mxu0 %v446_v1 }
  0x2f   : > { %312 = vmatpush1.bf16.msra.mxu0 %v436_v14 }
  0x30   : > { %313 = vmatprep.subr.bf16.mxu0 %v446_v1 }
  0x33   : > { %314 = vmatpush1.bf16.msra.mxu0 %v437_v15 }
  0x36   : > { %324 = vmatmul.mubr.bf16.vlgmr.msra.gmra.mrb[0].mxu0 %v182_v18 }
 0x109   : > { %v325_v20 = vpop.f32.mrb[0].mxu0 }
 0x10a   : > { %v326_v21 = vadd.f32 %v400_v19, %v325_v20  ;;  %v327_v22 = vpop.f32.mrb[1].mxu0 }
 0x10b   : > { %v328_v23 = vpop.f32.mrb[2].mxu0 }
 0x10c   : > { %332 = vst [vmem:[%s175_s23] sm:$0xff] %v326_v21  ;;  %v329_v24 = vadd.f32 %v400_v19, %v328_v23  ;;  %v330_v25 = vpop.f32.mrb[3].mxu0 }
 0x10e   : > { %333 = vst [vmem:[%s175_s23 + $0x8] sm:$0xff] %v329_v24 }
 0x10f PF: > { %s13_s12 = sadd.s32 1, %s444_s12  }
 0x110   : > { %p10_p4 = scmp.ge.s32.totalorder %s13_s12, 4  }
 0x112   :  { %12 = sbr.rel (!%p10_p4) target bundleno = 1 (0x1), region = 62 }

// kernel: _vit_forward.7
= control target key start
LH: loop header
LB: loop body
LE: loop exit
PB: predicated region body
PF: predicated region fallthrough
CT: control target
= control target key end

     0   :  { %vm25_vm0 = vcmask 1041408   ;;  %s355_s0 = inlined_call_operand.vmem [shape: f32[2,128], index: 0, kind: input, shape index: {}]   ;;  %s356_s1 = inlined_call_operand.vmem [shape: f32[1,128], index: 1, kind: input, shape index: {}]   ;;  %s357_s2 = inlined_call_operand.vmem [shape: f32[1,128], index: 2, kind: input, shape index: {}]   ;;  %s358_s3 = inlined_call_operand.vmem [shape: bf16[128,128], index: 3, kind: input, shape index: {}]   ;;  %s359_s4 = inlined_call_operand.vmem [shape: f32[1,128], index: 4, kind: input, shape index: {}]   ;;  %s360_s5 = inlined_call_operand.hbm [shape: f32[2,128], index: 5, kind: output, shape index: {}]  }
   0x1   :  { %v22_v0 = vld [vmem:[%s355_s0] sm:$0x3] }
   0x2   :  { %v26_v1 = vsel %vm25_vm0, %v22_v0, 0.0 }
   0x3   :  { %27 = vadd.xlane.f32.xlu0 %v26_v1 }
   0x4   :  { %10 = vsyncpa [#allocation3], 0  ;;  %v234_v2 = vld [vmem:[%s358_s3] sm:$0xff]   ;;  %v272_v3 = vmov 0.0   ;;  %v235_v4 = vld [vmem:[%s358_s3 + $0x8] sm:$0xff]   ;;  %vm273_vm1 = vmmov 0  }
   0x5   :  { %211 = vmatprep.subr.bf16.mxu0 %v272_v3  ;;  %v236_v10 = vld [vmem:[%s358_s3 + $0x10] sm:$0xff]   ;;  %v237_v11 = vld [vmem:[%s358_s3 + $0x18] sm:$0xff]   ;;  %v238_v12 = vld [vmem:[%s358_s3 + $0x20] sm:$0xff]   ;;  %227 = vmatprep.mubr.msk.bf16.mxu0 %vm273_vm1, %v272_v3 }
   0x6   :  { %212 = vmatpush3.bf16.msra.mxu0 %v234_v2  ;;  %v239_v13 = vld [vmem:[%s358_s3 + $0x28] sm:$0xff]   ;;  %v240_v14 = vld [vmem:[%s358_s3 + $0x30] sm:$0xff]   ;;  %v241_v15 = vld [vmem:[%s358_s3 + $0x38] sm:$0xff]  }
   0x7   :  { %213 = vmatprep.subr.bf16.mxu0 %v272_v3  ;;  %v191_v20 = vld [vmem:[%s356_s1] ss:$0 sm:$0xff]  ;;  %s274_s1 = smov [#allocation2]  }
   0x8   :  { %v192_v22 = vld [vmem:[%s357_s2] ss:$0 sm:$0xff]  ;;  %s183_s2 = sshll.u32 %s274_s1, 4  ;;  %s184_s2 = int_to_ptr.vmem [resolvable:$true] %s183_s2 }
   0x9   :  { %v193_v26 = vld [vmem:[%s359_s4] ss:$0 sm:$0xff]  ;;  %s248_s4 = scalar_lea.vmem %s184_s2, 32  ;;  %p253_p1 = scmp.lt.s32.totalorder %s184_s2, %s184_s2 }
   0xa   :  { %214 = vmatpush3.bf16.msra.mxu0 %v235_v4  ;;  %p249_p0 = scmp.ne.s32.totalorder %s184_s2, %s248_s4  ;;  %p254_p2 = scmp.lt.s32.totalorder %s248_s4, %s248_s4 }
   0xb   :  { %215 = vmatprep.subr.bf16.mxu0 %v272_v3 }
   0xc   :  { %p255_p3 = por %p254_p2, %p253_p1 }
   0xe   :  { %216 = vmatpush3.bf16.msra.mxu0 %v236_v10  ;;  %p256_p4 = pnand %p255_p3, %p249_p0 }
   0xf   :  { %217 = vmatprep.subr.bf16.mxu0 %v272_v3 }
  0x12   :  { %218 = vmatpush3.bf16.msra.mxu0 %v237_v11 }
  0x13   :  { %219 = vmatprep.subr.bf16.mxu0 %v272_v3 }
  0x16   :  { %220 = vmatpush3.bf16.msra.mxu0 %v238_v12 }
  0x17   :  { %221 = vmatprep.subr.bf16.mxu0 %v272_v3 }
  0x1a   :  { %222 = vmatpush3.bf16.msra.mxu0 %v239_v13 }
  0x1b   :  { %223 = vmatprep.subr.bf16.mxu0 %v272_v3 }
  0x1e   :  { %224 = vmatpush3.bf16.msra.mxu0 %v240_v14 }
  0x1f   :  { %225 = vmatprep.subr.bf16.mxu0 %v272_v3 }
  0x22   :  { %226 = vmatpush3.bf16.msra.mxu0 %v241_v15 }
  0x90   :  { %v28_v5 = vpop.xlane.xlu0 %27 }
  0x91   :  { %v30_v6 = vmul.f32 0.0078125, %v28_v5 }
  0x93   :  { %v31_v7 = vsub.f32 %v22_v0, %v30_v6 }
  0x95   :  { %v32_v8 = vmul.f32 %v31_v7, %v31_v7 }
  0x97   :  { %v33_v9 = vsel %vm25_vm0, %v32_v8, 0.0 }
  0x98   :  { %34 = vadd.xlane.f32.xlu0 %v33_v9 }
 0x125   :  { %v35_v16 = vpop.xlane.xlu0 %34 }
 0x126   :  { %v36_v17 = vmul.f32 0.0078125, %v35_v16 }
 0x128   :  { %v37_v18 = vadd.f32 1e-12, %v36_v17 }
 0x12a   :  { %242 = vrsqrt.f32 %v37_v18 }
 0x134   :  { %v243_v19 = vpop.eup %242 }
 0x135   :  { %v39_v21 = vmul.f32 %v243_v19, %v31_v7 }
 0x137   :  { %v46_v23 = vmul.f32 %v191_v20, %v39_v21 }
 0x139   :  { %v53_v24 = vadd.f32 %v192_v22, %v46_v23 }
 0x13b   :  { %v54_v25 = vpack.c.bf16 %v53_v24, %v53_v24 }
 0x13d   :  { %228 = vmatmul.mubr.bf16.vlgmr.msra.gmra.mrb[0].mxu0 %v54_v25 }
 0x210   :  { %v160_v27 = vpop.f32.mrb[0].mxu0 }
 0x211   :  { %v161_v28 = vadd.f32 %v193_v26, %v160_v27  ;;  %v229_v29 = vpop.f32.mrb[1].mxu0 }
 0x212   :  { %v163_v30 = vpop.f32.mrb[2].mxu0 }
 0x213   :  { %v166_v31 = vand.u32 2147483647, %v161_v28  ;;  %v230_v32 = vpop.f32.mrb[3].mxu0  ;;  %vm170_vm2 = vcmp.ge.f32.partialorder %v161_v28, 0.0 }
 0x215   :  { %v167_v33 = vsub.f32 0.0, %v166_v31 }
 0x217   :  { %v168_v34 = vmul.f32 1.442695, %v167_v33 }
 0x219   :  { %244 = vpow2.f32 %v168_v34 }
 0x223   :  { %v245_v35 = vpop.eup %244 }
 0x224   :  { %v171_v36 = vadd.f32 1.0, %v245_v35 }
 0x226   :  { %246 = vrcp.f32 %v171_v36 }
 0x230   :  { %v247_v37 = vpop.eup %246 }
 0x231   :  { %v174_v38 = vmul.f32 %v247_v37, %v245_v35 }
 0x233   :  { %v175_v39 = vsel %vm170_vm2, %v247_v37, %v174_v38 }
 0x234   :  { %176 = vst [vmem:[#allocation2] sm:$0x3] %v175_v39 }
 0x235   :  { %259 = shalt.err (!%p256_p4)
}
 0x236   :  { %s260_s17 = scalar_lea.hbm %s360_s5, 32 }
 0x237   :  { %p261_p5 = scmp.ne.s32.totalorder %s360_s5, %s260_s17  ;;  %p264_p6 = scmp.lt.u32.totalorder %s260_s17, %s360_s5 }
 0x239   :  { %p266_p7 = pnand %p264_p6, %p261_p5 }
 0x23b   :  { %269 = shalt.err (!%p266_p7)
}
 0x23c   :  { %186 = dma.vmem_to_hbm [thread:$0]  %s184_s2, 32, %s360_s5, [#allocation3]  }
 0x23d   :  { %270 = dma.done.wait [#allocation3], 32  }
 0x23e   :  { %271 = vsyncadd [#allocation3], 4294967264 }
 0x23f   :  { %190 = vsyncpa [#allocation3], 1 }

// kernel: _vit_forward.5
= control target key start
LH: loop header
LB: loop body
LE: loop exit
PB: predicated region body
PF: predicated region fallthrough
CT: control target
= control target key end

     0   :  { %s3212_s25 = smov 0   ;;  %s3911_s0 = inlined_call_operand.vmem [shape: f32[48,128], index: 0, kind: input, shape index: {}]   ;;  %s3912_s1 = inlined_call_operand.vmem [shape: f32[1,128], index: 1, kind: input, shape index: {}]   ;;  %s3913_s2 = inlined_call_operand.vmem [shape: f32[1,128], index: 2, kind: input, shape index: {}]   ;;  %s3914_s3 = inlined_call_operand.vmem [shape: bf16[128,384], index: 3, kind: input, shape index: {}]   ;;  %s3915_s4 = inlined_call_operand.vmem [shape: f32[1,384], index: 4, kind: input, shape index: {}]   ;;  %s3916_s5 = inlined_call_operand.vmem [shape: bf16[128,128], index: 5, kind: input, shape index: {}]   ;;  %s3917_s6 = inlined_call_operand.vmem [shape: f32[1,128], index: 6, kind: input, shape index: {}]   ;;  %s3918_s7 = inlined_call_operand.vmem [shape: f32[1,128], index: 7, kind: input, shape index: {}]   ;;  %s3919_s8 = inlined_call_operand.vmem [shape: f32[1,128], index: 8, kind: input, shape index: {}]   ;;  %s3920_s9 = inlined_call_operand.vmem [shape: bf16[128,512], index: 9, kind: input, shape index: {}]   ;;  %s3921_s10 = inlined_call_operand.vmem [shape: f32[1,512], index: 10, kind: input, shape index: {}]   ;;  %s3922_s11 = inlined_call_operand.vmem [shape: bf16[512,128], index: 11, kind: input, shape index: {}]   ;;  %s3923_s12 = inlined_call_operand.vmem [shape: f32[1,128], index: 12, kind: input, shape index: {}]   ;;  %s3924_s13 = inlined_call_operand.vmem [shape: f32[48,128], index: 13, kind: output, shape index: {}]  }
   0x1 LB: > { %s2545_s26 = sadd.s32 4294967295, %s3136_s25   ;;  %p2549_p0 = scmp.ge.s32.totalorder %s3136_s25, 1  ;;  %s3136_s25 = sphi %s3212_s25, %s23_s25  }
   0x2   : > { %p388_p1 = scmp.lt.s32.totalorder %s3136_s25, 3 }
   0x4   : > { %p389_p2 = pnand %p2549_p0, %p388_p1 }
   0x5   : > { %s432_s27 = smul.u32 (!%p389_p2), 3, %s2545_s26  ;;  %v2923_v3 = vld [vmem:[%s3914_s3 + $0x4] ss:$12 sps:$4 sm:$0xff] (!%p389_p2)   ;;  %v2925_v4 = vld [vmem:[%s3914_s3] ss:$12 sps:$4 sm:$0xff] (!%p389_p2)   ;;  %v3138_v35 = vmov (!%p389_p2), 0  }
   0x6   : > { %392 = sbr.rel (%p389_p2) target bundleno = 3580 (0xdfc), region = 72  ;;  %v2926_v5 = vld [vmem:[%s3914_s3 + $0x8] ss:$12 sps:$4 sm:$0xff] (!%p389_p2)   ;;  %681 = vmatprep.subr.bf16.mxu0 (!%p389_p2), %v2923_v3  ;;  %v2929_v19 = vld [vmem:[%s3914_s3 + $0x18] ss:$12 sps:$4 sm:$0xff] (!%p389_p2)   ;;  %713 = vmatprep.mubr.bf16.mxu0 (!%p389_p2), %v3138_v35  ;;  %vm792_vm0 = vcmask (!%p389_p2), 261120  }
   0x7   : > { %p433_p3 = scmp.lt.s32.totalorder (!%p389_p2), %s432_s27, 5  ;;  %v2927_v6 = vld [vmem:[%s3914_s3 + $0x1c] ss:$12 sps:$4 sm:$0xff] (!%p389_p2)   ;;  %2780 = vmatprep.subr.bf16.mxu1 (!%p389_p2), %v2926_v5  ;;  %682 = vmatpush1.bf16.msra.mxu0 (!%p389_p2), %v2925_v4  ;;  %v2930_v20 = vld [vmem:[%s3914_s3 + $0x20] ss:$12 sps:$4 sm:$0xff] (!%p389_p2)   ;;  %vm898_vm1 = vcmask (!%p389_p2), 1043456  }
   0x8   : > { %2781 = vmatpush3.bf16.msra.mxu1 (!%p389_p2), %v2926_v5  ;;  %683 = vmatprep.subr.bf16.mxu0 (!%p389_p2), %v2927_v6  ;;  %v2931_v21 = vld [vmem:[%s3914_s3 + $0x34] ss:$12 sps:$4 sm:$0xff] (!%p389_p2)   ;;  %v2933_v22 = vld [vmem:[%s3914_s3 + $0x30] ss:$12 sps:$4 sm:$0xff] (!%p389_p2)   ;;  %v2934_v23 = vld [vmem:[%s3914_s3 + $0x38] ss:$12 sps:$4 sm:$0xff] (!%p389_p2)  }
   0x9   : > { %2782 = vmatprep.subr.bf16.mxu1 (!%p389_p2), %v2930_v20  ;;  %v2935_v24 = vld [vmem:[%s3914_s3 + $0x4c] ss:$12 sps:$4 sm:$0xff] (!%p389_p2)   ;;  %v2937_v25 = vld [vmem:[%s3914_s3 + $0x48] ss:$12 sps:$4 sm:$0xff] (!%p389_p2)   ;;  %v2938_v26 = vld [vmem:[%s3914_s3 + $0x50] ss:$12 sps:$4 sm:$0xff] (!%p389_p2)  }
   0xa   : > { %v2939_v27 = vld [vmem:[%s3914_s3 + $0x64] ss:$12 sps:$4 sm:$0xff] (!%p389_p2)   ;;  %v2941_v28 = vld [vmem:[%s3914_s3 + $0x60] ss:$12 sps:$4 sm:$0xff] (!%p389_p2)   ;;  %v2942_v29 = vld [vmem:[%s3914_s3 + $0x68] ss:$12 sps:$4 sm:$0xff] (!%p389_p2)  }
   0xb   : > { %684 = vmatpush1.bf16.msra.mxu0 (!%p389_p2), %v2929_v19  ;;  %v2943_v30 = vld [vmem:[%s3914_s3 + $0x7c] ss:$12 sps:$4 sm:$0xff] (!%p389_p2)   ;;  %v2946_v31 = vld [vmem:[%s3914_s3 + $0x80] ss:$12 sps:$4 sm:$0xff] (!%p389_p2)   ;;  %v2945_v32 = vld [vmem:[%s3914_s3 + $0x78] ss:$12 sps:$4 sm:$0xff] (!%p389_p2)  }
   0xc   : > { %2783 = vmatpush3.bf16.msra.mxu1 (!%p389_p2), %v2930_v20  ;;  %685 = vmatprep.subr.bf16.mxu0 (!%p389_p2), %v2931_v21  ;;  %v2947_v33 = vld [vmem:[%s3914_s3 + $0x94] ss:$12 sps:$4 sm:$0xff] (!%p389_p2)   ;;  %v2950_v34 = vld [vmem:[%s3914_s3 + $0x98] ss:$12 sps:$4 sm:$0xff] (!%p389_p2)   ;;  %v2949_v36 = vld [vmem:[%s3914_s3 + $0x90] ss:$12 sps:$4 sm:$0xff] (!%p389_p2)  }
   0xd   : > { %s3926_s27 = smov (!%p433_p3, %s432_s27), 5  ;;  %2784 = vmatprep.subr.bf16.mxu1 %v2934_v23  ;;  %v2951_v37 = vld [vmem:[%s3914_s3 + $0xac] ss:$12 sps:$4 sm:$0xff]   ;;  %v2954_v38 = vld [vmem:[%s3914_s3 + $0xb0] ss:$12 sps:$4 sm:$0xff]   ;;  %vm856_vm3 = vcmask 195584  }
   0xe   : > { %s2550_s28 = sshll.u32 %s3926_s27, 3  ;;  %v2953_v39 = vld [vmem:[%s3914_s3 + $0xa8] ss:$12 sps:$4 sm:$0xff]   ;;  %v2552_v51 = vld [vmem:[%s3912_s1] ss:$0 sm:$0xff]  ;;  %s3139_s17 = smov 96  }
   0xf   : > { %s3228_s14 = scalar_lea.vmem %s3911_s0, %s2550_s28  ;;  %686 = vmatpush1.bf16.msra.mxu0 %v2933_v22  ;;  %v2553_v57 = vld [vmem:[%s3913_s2] ss:$0 sm:$0xff]  ;;  %s3140_s18 = smov 64   ;;  %vm1499_vm4 = vcmask 523264   ;;  %vm1503_vm5 = vcmask 785408  }
  0x10   : > { %v445_v0 = vld [vmem:[%s3228_s14] sm:$0xff]  ;;  %v447_v1 = vld [vmem:[%s3228_s14 + $0x10] sm:$0xff]  ;;  %v446_v2 = vld [vmem:[%s3228_s14 + $0x8] sm:$0xff]  ;;  %2785 = vmatpush3.bf16.msra.mxu1 %v2934_v23  ;;  %687 = vmatprep.subr.bf16.mxu0 %v2935_v24  ;;  %s3141_s19 = smov 32  }
  0x11   : > { %450 = vadd.xlane.f32.xlu0 %v445_v0  ;;  %454 = vadd.xlane.f32.xlu1 %v447_v1  ;;  %v536_v4 = vld [vmem:[%s3915_s4] sm:$0x7] }
  0x12   : > { %2786 = vmatprep.subr.bf16.mxu1 %v2938_v26 }
  0x13   : > { %688 = vmatpush1.bf16.msra.mxu0 %v2937_v25 }
  0x14   : > { %2787 = vmatpush3.bf16.msra.mxu1 %v2938_v26  ;;  %689 = vmatprep.subr.bf16.mxu0 %v2939_v27 }
  0x15   : > { %452 = vadd.xlane.f32.xlu0 %v446_v2  ;;  %2788 = vmatprep.subr.bf16.mxu1 %v2942_v29 }
  0x17   : > { %690 = vmatpush1.bf16.msra.mxu0 %v2941_v28 }
  0x18   : > { %2789 = vmatpush3.bf16.msra.mxu1 %v2942_v29  ;;  %691 = vmatprep.subr.bf16.mxu0 %v2943_v30 }
  0x19   : > { %2790 = vmatprep.subr.bf16.mxu1 %v2946_v31 }
  0x1b   : > { %692 = vmatpush1.bf16.msra.mxu0 %v2945_v32 }
  0x1c   : > { %2791 = vmatpush3.bf16.msra.mxu1 %v2946_v31  ;;  %693 = vmatprep.subr.bf16.mxu0 %v2947_v33 }
  0x1d   : > { %2792 = vmatprep.subr.bf16.mxu1 %v2950_v34 }
  0x1f   : > { %694 = vmatpush1.bf16.msra.mxu0 %v2949_v36 }
  0x20   : > { %2793 = vmatpush3.bf16.msra.mxu1 %v2950_v34  ;;  %695 = vmatprep.subr.bf16.mxu0 %v2951_v37 }
  0x21   : > { %2794 = vmatprep.subr.bf16.mxu1 %v2954_v38 }
  0x23   : > { %696 = vmatpush1.bf16.msra.mxu0 %v2953_v39 }
  0x24   : > { %2795 = vmatpush3.bf16.msra.mxu1 %v2954_v38 }
  0x9e   : > { %v451_v7 = vpop.xlane.xlu0 %450  ;;  %v455_v8 = vpop.xlane.xlu1 %454 }
  0x9f   : > { %v457_v9 = vmul.f32 0.0078125, %v451_v7  ;;  %v459_v10 = vmul.f32 0.0078125, %v455_v8 }
  0xa1   : > { %v3245_v11 = vsub.f32 %v445_v0, %v457_v9  ;;  %v3247_v12 = vsub.f32 %v447_v1, %v459_v10  ;;  %v538_v1 = vlaneseq }
  0xa2   : > { %v453_v13 = vpop.xlane.xlu0 %452 }
  0xa3   : > { %v458_v14 = vmul.f32 0.0078125, %v453_v13  ;;  %v463_v15 = vmul.f32 %v3245_v11, %v3245_v11  ;;  %v465_v17 = vmul.f32 %v3247_v12, %v3247_v12 }
  0xa5   : > { %v3251_v16 = vsub.f32 %v446_v2, %v458_v14  ;;  %466 = vadd.xlane.f32.xlu1 %v463_v15  ;;  %v3328_v2 = vshrl.u32 %v538_v1, 7 }
  0xa7   : > { %v464_v18 = vmul.f32 %v3251_v16, %v3251_v16  ;;  %v540_v3 = vsub.s32 0, %v3328_v2  ;;  %v544_v5 = vsub.s32 1, %v3328_v2  ;;  %v548_v7 = vsub.s32 2, %v3328_v2 }
  0xa9   : > { %470 = vadd.xlane.f32.xlu1 %v465_v17  ;;  %468 = vadd.xlane.f32.xlu0 %v464_v18  ;;  %v541_v6 = vrot.slane %v536_v4, %v540_v3  ;;  %v545_v9 = vrot.slane %v536_v4, %v544_v5 }
 0x132   : > { %v467_v40 = vpop.xlane.xlu1 %466 }
 0x133   : > { %v472_v41 = vmul.f32 0.0078125, %v467_v40 }
 0x135   : > { %v475_v42 = vadd.f32 1e-12, %v472_v41 }
 0x136   : > { %v471_v43 = vpop.xlane.xlu1 %470  ;;  %v469_v44 = vpop.xlane.xlu0 %468 }
 0x137   : > { %3043 = vrsqrt.f32 %v475_v42  ;;  %v474_v45 = vmul.f32 0.0078125, %v471_v43  ;;  %v473_v46 = vmul.f32 0.0078125, %v469_v44  ;;  %v3372_v44 = vand.u32 127, %v538_v1 }
 0x139   : > { %v477_v47 = vadd.f32 1e-12, %v474_v45  ;;  %v476_v48 = vadd.f32 1e-12, %v473_v46  ;;  %vm782_vm2 = vcmp.lt.s32.totalorder %v3372_v44, 17 }
 0x13b   : > { %3045 = vrsqrt.f32 %v477_v47 }
 0x13c   : > { %3047 = vrsqrt.f32 %v476_v48 }
 0x141   : > { %v3044_v49 = vpop.eup %3043 }
 0x142   : > { %v481_v50 = vmul.f32 %v3044_v49, %v3245_v11 }
 0x144   : > { %v490_v56 = vmul.f32 %v2552_v51, %v481_v50 }
 0x145   : > { %v3046_v52 = vpop.eup %3045 }
 0x146   : > { %v3048_v53 = vpop.eup %3047  ;;  %v483_v54 = vmul.f32 %v3046_v52, %v3247_v12  ;;  %v499_v61 = vadd.f32 %v2553_v57, %v490_v56  ;;  %v549_v12 = vrot.slane %v536_v4, %v548_v7 }
 0x147   : > { %v482_v55 = vmul.f32 %v3048_v53, %v3251_v16 }
 0x148   : > { %v492_v58 = vmul.f32 %v2552_v51, %v483_v54 }
 0x149   : > { %v491_v59 = vmul.f32 %v2552_v51, %v482_v55 }
 0x14a   : > { %v501_v60 = vadd.f32 %v2553_v57, %v492_v58 }
 0x14b   : > { %v500_v62 = vadd.f32 %v2553_v57, %v491_v59 }
 0x14c   : > { %v503_v63 = vpack.c.bf16 %v501_v60, %v501_v60 }
 0x14d   : > { %v502_v0 = vpack.c.bf16 %v500_v62, %v499_v61 }
 0x14f   : > { %714 = vmatmul.mubr.bf16.vlgmr.msra.gmra.mrb[0].mxu0 %v502_v0  ;;  %2796 = vmatprep.mubr.bf16.mxu1 %v502_v0 }
 0x150   : > { %2797 = vmatmul.mubr.bf16.vlgmr.msra.gmra.mrb[0].mxu1 %v503_v63  ;;  %723 = vmatprep.mubr.bf16.mxu0 %v3138_v35 }
 0x157   : > { %724 = vmatmul.mubr.bf16.gmra.mrb[4].mxu0 %v503_v63 }
 0x222   : > { %v715_v8 = vpop.f32.mrb[0].mxu0 }
 0x223   : > { %v716_v10 = vadd.f32 %v715_v8, %v541_v6  ;;  %v717_v11 = vpop.f32.mrb[1].mxu0  ;;  %v2798_v13 = vpop.f32.mrb[0].mxu1 }
 0x224   : > { %v719_v14 = vpop.f32.mrb[2].mxu0  ;;  %v766_v15 = vpop.f32.mrb[1].mxu1  ;;  %v718_v19 = vadd.f32 %v717_v11, %v545_v9  ;;  %v775_v26 = vadd.f32 %v2798_v13, %v549_v12 }
 0x225   : > { %v720_v16 = vadd.f32 %v719_v14, %v541_v6  ;;  %v721_v17 = vpop.f32.mrb[3].mxu0  ;;  %v2799_v18 = vpop.f32.mrb[2].mxu1  ;;  %v783_v22 = vmul.f32 0.17677669, %v716_v10  ;;  %v767_v24 = vadd.f32 %v766_v15, %v549_v12 }
 0x226   : > { %v722_v20 = vadd.f32 %v721_v17, %v545_v9  ;;  %v769_v21 = vpop.f32.mrb[3].mxu1  ;;  %v3354_v33 = vpack.c.bf16 %v775_v26, %v775_v26 }
 0x227   : > { %v784_v23 = vmul.f32 0.17677669, %v720_v16  ;;  %v770_v25 = vadd.f32 %v769_v21, %v549_v12 }
 0x228   : > { %v3342_v27 = vpack.c.bf16 %v722_v20, %v718_v19  ;;  %v900_v40 = vsel %vm898_vm1, %v3354_v33, 0 }
 0x229   : > { %v3344_v28 = vpack.c.bf16 %v784_v23, %v783_v22  ;;  %v3346_v29 = vpack.c.bf16 %v770_v25, %v767_v24 }
 0x22a   : > { %v725_v30 = vpop.f32.mrb[4].mxu0  ;;  %2884 = vmatprep.subr.msk.bf16.mxu0 %vm792_vm0, %v3342_v27  ;;  %v800_v31 = vsel %vm792_vm0, %v3342_v27, 0 }
 0x22b   : > { %v727_v32 = vpop.f32.mrb[5].mxu0  ;;  %2801 = vmatpush3.bf16.xpose.msra.mxu0 %v800_v31  ;;  %2804 = vmatprep.mubr.msk.bf16.mxu0 %vm792_vm0, %v3344_v28  ;;  %v726_v39 = vadd.f32 %v725_v30, %v541_v6 }
 0x22c   : > { %v728_v34 = vadd.f32 %v727_v32, %v545_v9  ;;  %2808 = vmatprep.subr.bf16.mxu1 %v3346_v29  ;;  %v729_v36 = vpop.f32.mrb[6].mxu0 }
 0x22d   : > { %2809 = vmatpush3.bf16.msra.mxu1 %v3346_v29  ;;  %v730_v37 = vpop.f32.mrb[7].mxu0  ;;  %v785_v42 = vmul.f32 0.17677669, %v726_v39 }
 0x22e   : > { %v3358_v38 = vpack.c.bf16 %v728_v34, %v728_v34  ;;  %2886 = vmatprep.subr.msk.bf16.mxu1 %vm898_vm1, %v3354_v33 }
 0x22f   : > { %v3368_v43 = vpack.c.bf16 %v785_v42, %v785_v42 }
 0x230   : > { %2885 = vmatprep.subr.msk.bf16.mxu0 %vm792_vm0, %v3358_v38  ;;  %v803_v41 = vsel %vm792_vm0, %v3358_v38, 0 }
 0x231   : > { %2811 = vmatpush3.bf16.msra.mxu1 %v900_v40 }
 0x233   : > { %2803 = vmatpush3.bf16.xpose.msra.mxu0 %v803_v41 }
 0x23a   : > { %2805 = vmatmul.mubr.msk.bf16.vlgmr.msra.gmra.mrb[8].mxu0 %vm792_vm0, %v3368_v43 }
 0x30d   : > { %v2806_v45 = vpop.f32.mrb[8].mxu0 }
 0x30e   : > { %v839_v46 = vpop.f32.mrb[9].mxu0  ;;  %v855_v51 = vsel %vm782_vm2, %v2806_v45, -1e+30 }
 0x30f   : > { %v853_v47 = vsel %vm782_vm2, %v839_v46, -1e+30  ;;  %v2807_v48 = vpop.f32.mrb[10].mxu0  ;;  %v863_v54 = vsel %vm856_vm3, %v855_v51, -inf }
 0x310   : > { %v842_v49 = vpop.f32.mrb[11].mxu0  ;;  %v857_v50 = vsel %vm856_vm3, %v853_v47, -inf }
 0x311   : > { %v854_v52 = vsel %vm782_vm2, %v842_v49, -1e+30  ;;  %858 = vmax.xlane.f32.xlu0 %v857_v50 }
 0x312   : > { %v860_v53 = vsel %vm856_vm3, %v854_v52, -inf }
 0x313   : > { %861 = vmax.xlane.f32.xlu1 %v860_v53 }
 0x315   : > { %864 = vmax.xlane.f32.xlu0 %v863_v54 }
 0x39e   : > { %v859_v55 = vpop.xlane.xlu0 %858 }
 0x39f   : > { %v866_v56 = vsub.f32 %v853_v47, %v859_v55 }
 0x3a0   : > { %v862_v57 = vpop.xlane.xlu1 %861 }
 0x3a1   : > { %v869_v58 = vmul.f32 1.442695, %v866_v56  ;;  %v867_v59 = vsub.f32 %v854_v52, %v862_v57 }
 0x3a2   : > { %v865_v60 = vpop.xlane.xlu0 %864 }
 0x3a3   : > { %3049 = vpow2.f32 %v869_v58  ;;  %v871_v61 = vmul.f32 1.442695, %v867_v59  ;;  %v868_v62 = vsub.f32 %v855_v51, %v865_v60 }
 0x3a5   : > { %3051 = vpow2.f32 %v871_v61  ;;  %v873_v63 = vmul.f32 1.442695, %v868_v62 }
 0x3a7   : > { %3053 = vpow2.f32 %v873_v63 }
 0x3ad   : > { %v3050_v0 = vpop.eup %3049 }
 0x3ae   : > { %v875_v1 = vsel %vm856_vm3, %v3050_v0, 0.0 }
 0x3af   : > { %v3052_v4 = vpop.eup %3051  ;;  %876 = vadd.xlane.f32.xlu1 %v875_v1 }
 0x3b0   : > { %v878_v6 = vsel %vm856_vm3, %v3052_v4, 0.0 }
 0x3b1   : > { %v3054_v8 = vpop.eup %3053  ;;  %879 = vadd.xlane.f32.xlu0 %v878_v6 }
 0x3b2   : > { %v881_v9 = vsel %vm856_vm3, %v3054_v8, 0.0 }
 0x3b3   : > { %882 = vadd.xlane.f32.xlu1 %v881_v9 }
 0x3c4   : > { %960 = vrot.lane.b32.xlu1 %v3358_v38, %s3139_s17 }
 0x3c7   : > { %958 = vrot.lane.b32.xlu0 %v3342_v27, %s3139_s17 }
 0x3c8   : > { %952 = vrot.lane.b32.xlu1 %v3344_v28, %s3139_s17 }
 0x3cb   : > { %954 = vrot.lane.b32.xlu0 %v3368_v43, %s3139_s17 }
 0x3cc   : > { %1128 = vrot.lane.b32.xlu1 %v3342_v27, %s3140_s18 }
 0x3cf   : > { %1124 = vrot.lane.b32.xlu0 %v3344_v28, %s3140_s18 }
 0x3d0   : > { %1130 = vrot.lane.b32.xlu1 %v3358_v38, %s3140_s18 }
 0x3d4   : > { %1126 = vrot.lane.b32.xlu1 %v3368_v43, %s3140_s18 }
 0x43c   : > { %v877_v10 = vpop.xlane.xlu1 %876 }
 0x43d   : > { %3055 = vrcp.f32 %v877_v10 }
 0x43e   : > { %v880_v11 = vpop.xlane.xlu0 %879 }
 0x43f   : > { %3057 = vrcp.f32 %v880_v11 }
 0x440   : > { %v883_v12 = vpop.xlane.xlu1 %882 }
 0x441   : > { %3059 = vrcp.f32 %v883_v12 }
 0x442   : > { %v959_v13 = vpop.permute.xlu0 %958 }
 0x443   : > { %2887 = vmatprep.subr.msk.bf16.mxu1 %vm792_vm0, %v959_v13  ;;  %v969_v23 = vsel %vm792_vm0, %v959_v13, 0 }
 0x444   : > { %v961_v16 = vpop.permute.xlu1 %960 }
 0x445   : > { %v972_v25 = vsel %vm792_vm0, %v961_v16, 0 }
 0x446   : > { %v955_v30 = vpop.permute.xlu0 %954 }
 0x447   : > { %v3056_v14 = vpop.eup %3055 }
 0x448   : > { %v887_v17 = vmul.f32 %v3056_v14, %v3050_v0  ;;  %v953_v24 = vpop.permute.xlu1 %952 }
 0x449   : > { %v3058_v15 = vpop.eup %3057 }
 0x44a   : > { %v888_v18 = vmul.f32 %v3058_v15, %v3052_v4  ;;  %v1125_v31 = vpop.permute.xlu0 %1124 }
 0x44b   : > { %v3060_v19 = vpop.eup %3059 }
 0x44c   : > { %v889_v20 = vmul.f32 %v3060_v19, %v3054_v8  ;;  %v890_v21 = vpack.c.bf16 %v888_v18, %v887_v17  ;;  %v1129_v26 = vpop.permute.xlu1 %1128 }
 0x44d   : > { %v1139_v32 = vsel %vm792_vm0, %v1129_v26, 0 }
 0x44e   : > { %2812 = vmatprep.mubr.msk.bf16.mxu1 %vm856_vm3, %v890_v21  ;;  %v891_v22 = vpack.c.bf16 %v889_v20, %v889_v20 }
 0x450   : > { %2813 = vmatmul.mubr.msk.bf16.vlgmr.msra.gmra.mrb[4].mxu1 %vm856_vm3, %v891_v22  ;;  %v1131_v34 = vpop.permute.xlu1 %1130 }
 0x451   : > { %2817 = vmatpush3.bf16.xpose.msra.mxu1 %v969_v23  ;;  %2820 = vmatprep.mubr.msk.bf16.mxu1 %vm792_vm0, %v953_v24  ;;  %v1142_v36 = vsel %vm792_vm0, %v1131_v34, 0 }
 0x452   : > { %2888 = vmatprep.subr.msk.bf16.mxu1 %vm792_vm0, %v961_v16 }
 0x454   : > { %v1127_v37 = vpop.permute.xlu1 %1126 }
 0x459   : > { %2819 = vmatpush3.bf16.xpose.msra.mxu1 %v972_v25 }
 0x45a   : > { %2890 = vmatprep.subr.msk.bf16.mxu1 %vm792_vm0, %v1129_v26 }
 0x460   : > { %2821 = vmatmul.mubr.msk.bf16.vlgmr.msra.gmra.mrb[8].mxu1 %vm792_vm0, %v955_v30 }
 0x461   : > { %2833 = vmatpush3.bf16.xpose.msra.mxu1 %v1139_v32  ;;  %2836 = vmatprep.mubr.msk.bf16.mxu1 %vm792_vm0, %v1125_v31 }
 0x462   : > { %2891 = vmatprep.subr.msk.bf16.mxu1 %vm792_vm0, %v1131_v34 }
 0x469   : > { %2835 = vmatpush3.bf16.xpose.msra.mxu1 %v1142_v36 }
 0x470   : > { %2837 = vmatmul.mubr.msk.bf16.vlgmr.msra.gmra.mrb[12].mxu1 %vm792_vm0, %v1127_v37 }
 0x523   : > { %v3417_v39 = vpop.f32.mrb[4].mxu1 }
 0x524   : > { %v3419_v40 = vpop.f32.mrb[5].mxu1 }
 0x525   : > { %v2815_v41 = vpop.f32.mrb[6].mxu1 }
 0x526   : > { %v3421_v42 = vpop.f32.mrb[7].mxu1 }
 0x533   : > { %v2822_v45 = vpop.f32.mrb[8].mxu1 }
 0x534   : > { %v1008_v46 = vpop.f32.mrb[9].mxu1 }
 0x535   : > { %v2823_v47 = vpop.f32.mrb[10].mxu1  ;;  %v1022_v14 = vsel %vm782_vm2, %v1008_v46, -1e+30 }
 0x536   : > { %v1011_v48 = vpop.f32.mrb[11].mxu1  ;;  %v1025_v15 = vsel %vm856_vm3, %v1022_v14, -inf }
 0x543   : > { %v2838_v49 = vpop.f32.mrb[12].mxu1 }
 0x544   : > { %v1178_v50 = vpop.f32.mrb[13].mxu1  ;;  %v1194_v55 = vsel %vm782_vm2, %v2838_v49, -1e+30 }
 0x545   : > { %v1192_v51 = vsel %vm782_vm2, %v1178_v50, -1e+30  ;;  %v2839_v52 = vpop.f32.mrb[14].mxu1  ;;  %v1201_v58 = vsel %vm856_vm3, %v1194_v55, -inf }
 0x546   : > { %v1181_v53 = vpop.f32.mrb[15].mxu1  ;;  %v1195_v54 = vsel %vm856_vm3, %v1192_v51, -inf }
 0x547   : > { %v1193_v56 = vsel %vm782_vm2, %v1181_v53, -1e+30  ;;  %1196 = vmax.xlane.f32.xlu0 %v1195_v54 }
 0x548   : > { %v1198_v57 = vsel %vm856_vm3, %v1193_v56, -inf }
 0x549   : > { %1199 = vmax.xlane.f32.xlu1 %v1198_v57 }
 0x54b   : > { %1202 = vmax.xlane.f32.xlu0 %v1201_v58 }
 0x5d4   : > { %v1197_v59 = vpop.xlane.xlu0 %1196 }
 0x5d5   : > { %v1204_v60 = vsub.f32 %v1192_v51, %v1197_v59 }
 0x5d6   : > { %v1200_v61 = vpop.xlane.xlu1 %1199 }
 0x5d7   : > { %v1207_v62 = vmul.f32 1.442695, %v1204_v60  ;;  %v1205_v63 = vsub.f32 %v1193_v56, %v1200_v61 }
 0x5d8   : > { %v1203_v0 = vpop.xlane.xlu0 %1202 }
 0x5d9   : > { %3061 = vpow2.f32 %v1207_v62  ;;  %v1209_v1 = vmul.f32 1.442695, %v1205_v63  ;;  %v1206_v4 = vsub.f32 %v1194_v55, %v1203_v0 }
 0x5db   : > { %3063 = vpow2.f32 %v1209_v1  ;;  %v1211_v6 = vmul.f32 1.442695, %v1206_v4 }
 0x5dd   : > { %3065 = vpow2.f32 %v1211_v6 }
 0x5e3   : > { %v3062_v8 = vpop.eup %3061 }
 0x5e4   : > { %v1213_v9 = vsel %vm856_vm3, %v3062_v8, 0.0 }
 0x5e5   : > { %v3064_v10 = vpop.eup %3063  ;;  %1214 = vadd.xlane.f32.xlu0 %v1213_v9 }
 0x5e6   : > { %v1216_v13 = vsel %vm856_vm3, %v3064_v10, 0.0 }
 0x5e7   : > { %v3066_v11 = vpop.eup %3065 }
 0x5e8   : > { %v1219_v12 = vsel %vm856_vm3, %v3066_v11, 0.0 }
 0x5e9   : > { %1220 = vadd.xlane.f32.xlu1 %v1219_v12  ;;  %1217 = vadd.xlane.f32.xlu0 %v1216_v13 }
 0x5fa   : > { %1232 = vrot.lane.b32.xlu1 %v3354_v33, %s3140_s18 }
 0x5fe   : > { %1296 = vrot.lane.b32.xlu1 %v3342_v27, %s3141_s19  ;;  %v1024_v27 = vsel %vm782_vm2, %v2822_v45, -1e+30 }
 0x5ff   : > { %1230 = vrot.lane.b32.xlu0 %v3346_v29, %s3140_s18  ;;  %v1031_v16 = vsel %vm856_vm3, %v1024_v27, -inf }
 0x602   : > { %1298 = vrot.lane.b32.xlu1 %v3358_v38, %s3141_s19  ;;  %v1023_v38 = vsel %vm782_vm2, %v1011_v48, -1e+30 }
 0x603   : > { %1292 = vrot.lane.b32.xlu0 %v3344_v28, %s3141_s19  ;;  %v1028_v28 = vsel %vm856_vm3, %v1023_v38, -inf }
 0x606   : > { %1294 = vrot.lane.b32.xlu1 %v3368_v43, %s3141_s19 }
 0x622   : > { %1026 = vmax.xlane.f32.xlu0 %v1025_v15 }
 0x626   : > { %1032 = vmax.xlane.f32.xlu0 %v1031_v16 }
 0x62a   : > { %1029 = vmax.xlane.f32.xlu1 %v1028_v28 }
 0x672   : > { %v1215_v17 = vpop.xlane.xlu0 %1214 }
 0x673   : > { %3067 = vrcp.f32 %v1215_v17 }
 0x676   : > { %v1218_v43 = vpop.xlane.xlu0 %1217  ;;  %v1221_v18 = vpop.xlane.xlu1 %1220 }
 0x677   : > { %3069 = vrcp.f32 %v1218_v43 }
 0x678   : > { %3071 = vrcp.f32 %v1221_v18 }
 0x67a   : > { %v1231_v19 = vpop.permute.xlu0 %1230  ;;  %v1233_v20 = vpop.permute.xlu1 %1232 }
 0x67b   : > { %2840 = vmatprep.subr.bf16.mxu1 %v1231_v19  ;;  %v1242_v22 = vsel %vm898_vm1, %v1233_v20, 0 }
 0x67c   : > { %2841 = vmatpush3.bf16.msra.mxu1 %v1231_v19 }
 0x67d   : > { %2892 = vmatprep.subr.msk.bf16.mxu1 %vm898_vm1, %v1233_v20  ;;  %v3068_v21 = vpop.eup %3067 }
 0x67e   : > { %v1297_v23 = vpop.permute.xlu1 %1296  ;;  %v1225_v26 = vmul.f32 %v3068_v21, %v3062_v8  ;;  %v1293_v36 = vpop.permute.xlu0 %1292 }
 0x67f   : > { %v1307_v37 = vsel %vm792_vm0, %v1297_v23, 0 }
 0x680   : > { %2843 = vmatpush3.bf16.msra.mxu1 %v1242_v22 }
 0x681   : > { %v3070_v24 = vpop.eup %3069  ;;  %2893 = vmatprep.subr.msk.bf16.mxu1 %vm792_vm0, %v1297_v23 }
 0x682   : > { %v3072_v25 = vpop.eup %3071  ;;  %v1226_v30 = vmul.f32 %v3070_v24, %v3064_v10  ;;  %v1299_v41 = vpop.permute.xlu1 %1298 }
 0x683   : > { %v1227_v31 = vmul.f32 %v3072_v25, %v3066_v11  ;;  %v1310_v45 = vsel %vm792_vm0, %v1299_v41, 0 }
 0x684   : > { %v1228_v32 = vpack.c.bf16 %v1226_v30, %v1225_v26 }
 0x685   : > { %v1229_v34 = vpack.c.bf16 %v1227_v31, %v1227_v31 }
 0x686   : > { %2844 = vmatprep.mubr.msk.bf16.mxu1 %vm856_vm3, %v1228_v32  ;;  %v1295_v46 = vpop.permute.xlu1 %1294 }
 0x687   : > { %2845 = vmatmul.mubr.msk.bf16.vlgmr.msra.gmra.mrb[16].mxu1 %vm856_vm3, %v1229_v34 }
 0x688   : > { %2852 = vmatprep.mubr.msk.bf16.mxu1 %vm792_vm0, %v1293_v36 }
 0x689   : > { %2849 = vmatpush3.bf16.xpose.msra.mxu1 %v1307_v37 }
 0x68a   : > { %2894 = vmatprep.subr.msk.bf16.mxu1 %vm792_vm0, %v1299_v41 }
 0x691   : > { %2851 = vmatpush3.bf16.xpose.msra.mxu1 %v1310_v45 }
 0x698   : > { %2853 = vmatmul.mubr.msk.bf16.vlgmr.msra.gmra.mrb[20].mxu1 %vm792_vm0, %v1295_v46 }
 0x699   : > { %1935 = vmatprep.mubr.bf16.mxu1 %v3138_v35 }
 0x6af   : > { %v1027_v50 = vpop.xlane.xlu0 %1026 }
 0x6b0   : > { %v1034_v56 = vsub.f32 %v1022_v14, %v1027_v50 }
 0x6b2   : > { %v1037_v58 = vmul.f32 1.442695, %v1034_v56 }
 0x6b3   : > { %v1033_v57 = vpop.xlane.xlu0 %1032 }
 0x6b4   : > { %v1036_v59 = vsub.f32 %v1024_v27, %v1033_v57 }
 0x6b6   : > { %v1041_v60 = vmul.f32 1.442695, %v1036_v59 }
 0x6b7   : > { %v1030_v47 = vpop.xlane.xlu1 %1029 }
 0x6b8   : > { %v1035_v51 = vsub.f32 %v1023_v38, %v1030_v47 }
 0x6ba   : > { %v1039_v55 = vmul.f32 1.442695, %v1035_v51 }
 0x6bc   : > { %3073 = vpow2.f32 %v1039_v55 }
 0x6bd   : > { %3075 = vpow2.f32 %v1037_v58 }
 0x6be   : > { %3077 = vpow2.f32 %v1041_v60 }
 0x6c6   : > { %v3074_v6 = vpop.eup %3073 }
 0x6c7   : > { %v1046_v11 = vsel %vm856_vm3, %v3074_v6, 0.0  ;;  %v3076_v13 = vpop.eup %3075 }
 0x6c8   : > { %v1043_v14 = vsel %vm856_vm3, %v3076_v13, 0.0  ;;  %v3078_v15 = vpop.eup %3077 }
 0x6c9   : > { %v1049_v27 = vsel %vm856_vm3, %v3078_v15, 0.0 }
 0x75a   : > { %v3467_v48 = vpop.f32.mrb[16].mxu1 }
 0x75b   : > { %v3469_v49 = vpop.f32.mrb[17].mxu1 }
 0x75c   : > { %v2847_v52 = vpop.f32.mrb[18].mxu1 }
 0x75d   : > { %v3471_v53 = vpop.f32.mrb[19].mxu1 }
 0x75e   : > { %v2913_v54 = vpack.i.bf16 %v3471_v53, %v3469_v49 }
 0x76b   : > { %v2854_v61 = vpop.f32.mrb[20].mxu1 }
 0x76c   : > { %v1362_v62 = vsel %vm782_vm2, %v2854_v61, -1e+30  ;;  %v1346_v63 = vpop.f32.mrb[21].mxu1 }
 0x76d   : > { %v1360_v0 = vsel %vm782_vm2, %v1346_v63, -1e+30  ;;  %v2855_v1 = vpop.f32.mrb[22].mxu1  ;;  %v1369_v4 = vsel %vm856_vm3, %v1362_v62, -inf }
 0x76e   : > { %1370 = vmax.xlane.f32.xlu1 %v1369_v4  ;;  %v1349_v8 = vpop.f32.mrb[23].mxu1  ;;  %v1363_v9 = vsel %vm856_vm3, %v1360_v0, -inf }
 0x76f   : > { %v1361_v10 = vsel %vm782_vm2, %v1349_v8, -1e+30  ;;  %1364 = vmax.xlane.f32.xlu0 %v1363_v9  ;;  %v2955_v8 = vld [vmem:[%s3916_s5] sm:$0xff]   ;;  %v2956_v9 = vld [vmem:[%s3916_s5 + $0x8] sm:$0xff]  }
 0x770   : > { %v1366_v12 = vsel %vm856_vm3, %v1361_v10, -inf }
 0x772   : > { %1047 = vadd.xlane.f32.xlu1 %v1046_v11  ;;  %v2958_v11 = vld [vmem:[%s3916_s5 + $0x18] sm:$0xff]  }
 0x773   : > { %1367 = vmax.xlane.f32.xlu0 %v1366_v12  ;;  %v2959_v12 = vld [vmem:[%s3916_s5 + $0x20] sm:$0xff]  }
 0x777   : > { %1044 = vadd.xlane.f32.xlu0 %v1043_v14  ;;  %v2961_v14 = vld [vmem:[%s3916_s5 + $0x30] sm:$0xff]  }
 0x77b   : > { %1050 = vadd.xlane.f32.xlu0 %v1049_v27 }
 0x7fb   : > { %v1371_v16 = vpop.xlane.xlu1 %1370 }
 0x7fc   : > { %v1374_v38 = vsub.f32 %v1362_v62, %v1371_v16  ;;  %v1365_v28 = vpop.xlane.xlu0 %1364  ;;  %v2962_v16 = vld [vmem:[%s3916_s5 + $0x38] sm:$0xff]  }
 0x7fd   : > { %v1372_v44 = vsub.f32 %v1360_v0, %v1365_v28 }
 0x7fe   : > { %v1379_v17 = vmul.f32 1.442695, %v1374_v38 }
 0x7ff   : > { %v1375_v43 = vmul.f32 1.442695, %v1372_v44  ;;  %v1048_v19 = vpop.xlane.xlu1 %1047 }
 0x800   : > { %3079 = vpow2.f32 %v1379_v17  ;;  %v1368_v18 = vpop.xlane.xlu0 %1367 }
 0x801   : > { %v1373_v20 = vsub.f32 %v1361_v10, %v1368_v18  ;;  %3081 = vpow2.f32 %v1375_v43  ;;  %v2957_v10 = vld [vmem:[%s3916_s5 + $0x10] sm:$0xff]  }
 0x802   : > { %3083 = vrcp.f32 %v1048_v19 }
 0x803   : > { %v1377_v21 = vmul.f32 1.442695, %v1373_v20 }
 0x804   : > { %v1045_v22 = vpop.xlane.xlu0 %1044 }
 0x805   : > { %3085 = vpow2.f32 %v1377_v21 }
 0x806   : > { %3087 = vrcp.f32 %v1045_v22 }
 0x808   : > { %v1051_v45 = vpop.xlane.xlu0 %1050 }
 0x809   : > { %3089 = vrcp.f32 %v1051_v45 }
 0x80a   : > { %v3080_v23 = vpop.eup %3079 }
 0x80b   : > { %v1387_v24 = vsel %vm856_vm3, %v3080_v23, 0.0  ;;  %v3082_v25 = vpop.eup %3081 }
 0x80c   : > { %1388 = vadd.xlane.f32.xlu1 %v1387_v24  ;;  %v3084_v26 = vpop.eup %3083  ;;  %v1381_v31 = vsel %vm856_vm3, %v3082_v25, 0.0 }
 0x80d   : > { %v1056_v37 = vmul.f32 %v3084_v26, %v3074_v6 }
 0x80f   : > { %v3086_v30 = vpop.eup %3085 }
 0x810   : > { %v3088_v32 = vpop.eup %3087  ;;  %1382 = vadd.xlane.f32.xlu1 %v1381_v31  ;;  %v1384_v34 = vsel %vm856_vm3, %v3086_v30, 0.0 }
 0x811   : > { %1385 = vadd.xlane.f32.xlu0 %v1384_v34  ;;  %v1055_v36 = vmul.f32 %v3088_v32, %v3076_v13  ;;  %v2960_v13 = vld [vmem:[%s3916_s5 + $0x28] sm:$0xff]  }
 0x813   : > { %v1058_v41 = vpack.c.bf16 %v1056_v37, %v1055_v36  ;;  %v3090_v52 = vpop.eup %3089 }
 0x814   : > { %v1057_v56 = vmul.f32 %v3090_v52, %v3078_v15 }
 0x815   : > { %2828 = vmatprep.mubr.msk.bf16.mxu0 %vm856_vm3, %v1058_v41 }
 0x816   : > { %v1059_v59 = vpack.c.bf16 %v1057_v56, %v1057_v56 }
 0x821   : > { %1064 = vrot.lane.b32.xlu1 %v3354_v33, %s3139_s17 }
 0x825   : > { %1398 = vrot.lane.b32.xlu1 %v3346_v29, %s3141_s19 }
 0x827   : > { %1062 = vrot.lane.b32.xlu0 %v3346_v29, %s3139_s17 }
 0x829   : > { %1400 = vrot.lane.b32.xlu1 %v3354_v33, %s3141_s19 }
 0x899   : > { %v1389_v46 = vpop.xlane.xlu1 %1388 }
 0x89d   : > { %v1383_v47 = vpop.xlane.xlu1 %1382 }
 0x89e   : > { %3091 = vrcp.f32 %v1383_v47  ;;  %v1386_v50 = vpop.xlane.xlu0 %1385 }
 0x89f   : > { %3093 = vrcp.f32 %v1386_v50 }
 0x8a0   : > { %3095 = vrcp.f32 %v1389_v46 }
 0x8a1   : > { %v1065_v51 = vpop.permute.xlu1 %1064 }
 0x8a2   : > { %v1063_v55 = vpop.permute.xlu0 %1062  ;;  %v1074_v57 = vsel %vm898_vm1, %v1065_v51, 0 }
 0x8a3   : > { %2824 = vmatprep.subr.bf16.mxu0 %v1063_v55 }
 0x8a4   : > { %2825 = vmatpush3.bf16.msra.mxu0 %v1063_v55  ;;  %v3127_v55 = vld [vmem:[%s3228_s14] sm:$0xff] }
 0x8a5   : > { %2889 = vmatprep.subr.msk.bf16.mxu0 %vm898_vm1, %v1065_v51  ;;  %v1399_v29 = vpop.permute.xlu1 %1398 }
 0x8a8   : > { %v3092_v33 = vpop.eup %3091  ;;  %2827 = vmatpush3.bf16.msra.mxu0 %v1074_v57 }
 0x8a9   : > { %v3094_v58 = vpop.eup %3093  ;;  %2856 = vmatprep.subr.bf16.mxu0 %v1399_v29  ;;  %v1393_v60 = vmul.f32 %v3092_v33, %v3082_v25  ;;  %v1401_v63 = vpop.permute.xlu1 %1400  ;;  %v3128_v33 = vld [vmem:[%s3228_s14 + $0x10] sm:$0xff] }
 0x8aa   : > { %v3096_v61 = vpop.eup %3095  ;;  %v1394_v62 = vmul.f32 %v3094_v58, %v3086_v30  ;;  %v1410_v4 = vsel %vm898_vm1, %v1401_v63, 0 }
 0x8ab   : > { %2829 = vmatmul.mubr.msk.bf16.vlgmr.msra.gmra.mrb[12].mxu0 %vm856_vm3, %v1059_v59  ;;  %v1395_v1 = vmul.f32 %v3096_v61, %v3080_v23 }
 0x8ac   : > { %2857 = vmatpush3.bf16.msra.mxu0 %v1399_v29  ;;  %v1396_v0 = vpack.c.bf16 %v1394_v62, %v1393_v60  ;;  %v3129_v60 = vld [vmem:[%s3228_s14 + $0x8] sm:$0xff] }
 0x8ad   : > { %2895 = vmatprep.subr.msk.bf16.mxu0 %vm898_vm1, %v1401_v63  ;;  %v1397_v6 = vpack.c.bf16 %v1395_v1, %v1395_v1  ;;  %v2965_v1 = vld [vmem:[%s3920_s9 + $0x4] ss:$16 sps:$4 sm:$0xff]  }
 0x8ae   : > { %2860 = vmatprep.mubr.msk.bf16.mxu0 %vm856_vm3, %v1396_v0  ;;  %v2963_v0 = vld [vmem:[%s3920_s9] ss:$16 sps:$4 sm:$0xff]   ;;  %1903 = vmatprep.subr.bf16.mxu1 %v2965_v1 }
 0x8af   : > { %1904 = vmatpush1.bf16.msra.mxu1 %v2963_v0 }
 0x8b0   : > { %2859 = vmatpush3.bf16.msra.mxu0 %v1410_v4  ;;  %v2966_v4 = vld [vmem:[%s3920_s9 + $0x8] ss:$16 sps:$4 sm:$0xff]  }
 0x8b1   : > { %2864 = vmatprep.subr.bf16.mxu0 %v2955_v8 }
 0x8b3   : > { %2861 = vmatmul.mubr.msk.bf16.vlgmr.msra.gmra.mrb[16].mxu0 %vm856_vm3, %v1397_v6  ;;  %v2968_v6 = vld [vmem:[%s3920_s9 + $0xc] ss:$16 sps:$4 sm:$0xff]  }
 0x8b4   : > { %2865 = vmatpush3.bf16.msra.mxu0 %v2955_v8  ;;  %v2971_v8 = vld [vmem:[%s3920_s9 + $0x24] ss:$16 sps:$4 sm:$0xff]  }
 0x8b5   : > { %2866 = vmatprep.subr.bf16.mxu0 %v2956_v9  ;;  %1905 = vmatprep.subr.bf16.mxu1 %v2971_v8  ;;  %v2604_v8 = vld [vmem:[%s3919_s8] ss:$0 sm:$0xff] }
 0x8b8   : > { %2867 = vmatpush3.bf16.msra.mxu0 %v2956_v9  ;;  %v2974_v9 = vld [vmem:[%s3920_s9 + $0x2c] ss:$16 sps:$4 sm:$0xff]  }
 0x8b9   : > { %2868 = vmatprep.subr.bf16.mxu0 %v2957_v10 }
 0x8bc   : > { %2869 = vmatpush3.bf16.msra.mxu0 %v2957_v10  ;;  %v2969_v10 = vld [vmem:[%s3920_s9 + $0x20] ss:$16 sps:$4 sm:$0xff]  }
 0x8bd   : > { %2870 = vmatprep.subr.bf16.mxu0 %v2958_v11  ;;  %1906 = vmatpush1.bf16.msra.mxu1 %v2969_v10 }
 0x8c0   : > { %2871 = vmatpush3.bf16.msra.mxu0 %v2958_v11  ;;  %v2972_v11 = vld [vmem:[%s3920_s9 + $0x28] ss:$16 sps:$4 sm:$0xff]  }
 0x8c1   : > { %2872 = vmatprep.subr.bf16.mxu0 %v2959_v12 }
 0x8c4   : > { %2873 = vmatpush3.bf16.msra.mxu0 %v2959_v12 }
 0x8c5   : > { %2874 = vmatprep.subr.bf16.mxu0 %v2960_v13 }
 0x8c8   : > { %2875 = vmatpush3.bf16.msra.mxu0 %v2960_v13 }
 0x8c9   : > { %2876 = vmatprep.subr.bf16.mxu0 %v2961_v14 }
 0x8cc   : > { %2877 = vmatpush3.bf16.msra.mxu0 %v2961_v14 }
 0x8cd   : > { %2878 = vmatprep.subr.bf16.mxu0 %v2962_v16 }
 0x8d0   : > { %2879 = vmatpush3.bf16.msra.mxu0 %v2962_v16 }
 0x8d1   : > { %1954 = vmatprep.subr.bf16.mxu0 %v2968_v6 }
 0x97e   : > { %v2830_v15 = vpop.f32.mrb[12].mxu0 }
 0x97f   : > { %1467 = vrot.lane.b32.xlu1 %v2830_v15, %s3141_s19  ;;  %v1110_v27 = vpop.f32.mrb[13].mxu0 }
 0x980   : > { %v2831_v38 = vpop.f32.mrb[14].mxu0 }
 0x981   : > { %v1113_v28 = vpop.f32.mrb[15].mxu0 }
 0x982   : > { %v2908_v44 = vpack.i.bf16 %v1113_v28, %v1110_v27 }
 0x983   : > { %1479 = vrot.lane.b32.xlu1 %v3467_v48, %s3140_s18 }
 0x984   : > { %2909 = vrot.lane.b32.xlu0 %v2908_v44, %s3141_s19 }
 0x986   : > { %v2862_v17 = vpop.f32.mrb[16].mxu0 }
 0x987   : > { %1491 = vrot.lane.b32.xlu1 %v2862_v17, %s3139_s17  ;;  %v1446_v43 = vpop.f32.mrb[17].mxu0 }
 0x988   : > { %2914 = vrot.lane.b32.xlu0 %v2913_v54, %s3140_s18  ;;  %v2863_v18 = vpop.f32.mrb[18].mxu0 }
 0x989   : > { %v1449_v19 = vpop.f32.mrb[19].mxu0 }
 0x98a   : > { %v2918_v20 = vpack.i.bf16 %v1449_v19, %v1446_v43  ;;  %v2977_v19 = vld [vmem:[%s3920_s9 + $0x44] ss:$16 sps:$4 sm:$0xff]  }
 0x98b   : > { %1907 = vmatprep.subr.bf16.mxu1 %v2977_v19  ;;  %v3019_v19 = vld [vmem:[%s3922_s11 + $0x50] sm:$0xff]  }
 0x98c   : > { %2919 = vrot.lane.b32.xlu0 %v2918_v20, %s3139_s17  ;;  %v2980_v20 = vld [vmem:[%s3920_s9 + $0x4c] ss:$16 sps:$4 sm:$0xff]   ;;  %s442_s17 = scalar_lea.vmem %s3924_s13, %s2550_s28 }
 0x9f1   : > { %v1468_v21 = vpop.permute.xlu1 %1467 }
 0x9f2   : > { %v1498_v31 = vsel %vm792_vm0, %v3417_v39, %v1468_v21  ;;  %v2975_v21 = vld [vmem:[%s3920_s9 + $0x40] ss:$16 sps:$4 sm:$0xff]  }
 0x9f3   : > { %1908 = vmatpush1.bf16.msra.mxu1 %v2975_v21  ;;  %v3021_v21 = vld [vmem:[%s3922_s11 + $0x10] sm:$0xff]  }
 0x9f5   : > { %v1480_v48 = vpop.permute.xlu1 %1479 }
 0x9f6   : > { %v2910_v22 = vpop.permute.xlu0 %2909  ;;  %v1502_v53 = vsel %vm1499_vm4, %v1498_v31, %v1480_v48  ;;  %v2983_v48 = vld [vmem:[%s3920_s9 + $0x64] ss:$16 sps:$4 sm:$0xff]   ;;  %v2987_v31 = vld [vmem:[%s3920_s9 + $0x80] ss:$16 sps:$4 sm:$0xff]  }
 0x9f7   : > { %v2912_v24 = vunpack.i.h.bf16 %v2910_v22  ;;  %v2911_v25 = vunpack.i.l.bf16 %v2910_v22  ;;  %v2978_v22 = vld [vmem:[%s3920_s9 + $0x48] ss:$16 sps:$4 sm:$0xff]   ;;  %1909 = vmatprep.subr.bf16.mxu1 %v2983_v48 }
 0x9f8   : > { %v3023_v48 = vld [vmem:[%s3922_s11 + $0x58] sm:$0xff]  }
 0x9f9   : > { %v1492_v49 = vpop.permute.xlu1 %1491  ;;  %v1497_v32 = vsel %vm792_vm0, %v3421_v42, %v2912_v24  ;;  %v1496_v34 = vsel %vm792_vm0, %v3419_v40, %v2911_v25  ;;  %v2602_v40 = vld [vmem:[%s3917_s6] ss:$0 sm:$0xff]  ;;  %v2984_v25 = vld [vmem:[%s3920_s9 + $0x68] ss:$16 sps:$4 sm:$0xff]  }
 0x9fa   : > { %v2915_v23 = vpop.permute.xlu0 %2914  ;;  %v1506_v41 = vsel %vm1503_vm5, %v1502_v53, %v1492_v49  ;;  %v2981_v24 = vld [vmem:[%s3920_s9 + $0x60] ss:$16 sps:$4 sm:$0xff]   ;;  %v2990_v49 = vld [vmem:[%s3920_s9 + $0x88] ss:$16 sps:$4 sm:$0xff]   ;;  %v2995_v53 = vld [vmem:[%s3920_s9 + $0xa4] ss:$16 sps:$4 sm:$0xff]  }
 0x9fb   : > { %v2917_v26 = vunpack.i.h.bf16 %v2915_v23  ;;  %v2916_v30 = vunpack.i.l.bf16 %v2915_v23  ;;  %v1508_v51 = vpack.c.bf16 %v1506_v41, %v1506_v41  ;;  %v2986_v23 = vld [vmem:[%s3920_s9 + $0x6c] ss:$16 sps:$4 sm:$0xff]   ;;  %1910 = vmatpush1.bf16.msra.mxu1 %v2981_v24  ;;  %v3002_v41 = vld [vmem:[%s3920_s9 + $0xc8] ss:$16 sps:$4 sm:$0xff]  }
 0x9fc   : > { %v3025_v24 = vld [vmem:[%s3922_s11 + $0x18] sm:$0xff]  }
 0x9fd   : > { %v1500_v45 = vsel %vm1499_vm4, %v1496_v34, %v2916_v30  ;;  %v1501_v39 = vsel %vm1499_vm4, %v1497_v32, %v2917_v26  ;;  %v2989_v26 = vld [vmem:[%s3920_s9 + $0x84] ss:$16 sps:$4 sm:$0xff]   ;;  %v2992_v30 = vld [vmem:[%s3920_s9 + $0x8c] ss:$16 sps:$4 sm:$0xff]   ;;  %v2993_v32 = vld [vmem:[%s3920_s9 + $0xa0] ss:$16 sps:$4 sm:$0xff]  }
 0x9fe   : > { %v2920_v54 = vpop.permute.xlu0 %2919  ;;  %1911 = vmatprep.subr.bf16.mxu1 %v2989_v26  ;;  %v2996_v34 = vld [vmem:[%s3920_s9 + $0xa8] ss:$16 sps:$4 sm:$0xff]   ;;  %v3027_v26 = vld [vmem:[%s3922_s11 + $0x60] sm:$0xff]  }
 0x9ff   : > { %v2922_v36 = vunpack.i.h.bf16 %v2920_v54  ;;  %v2921_v37 = vunpack.i.l.bf16 %v2920_v54  ;;  %1912 = vmatpush1.bf16.msra.mxu1 %v2987_v31  ;;  %v2998_v54 = vld [vmem:[%s3920_s9 + $0xac] ss:$16 sps:$4 sm:$0xff]   ;;  %v3029_v31 = vld [vmem:[%s3922_s11 + $0x20] sm:$0xff]  }
 0xa00   : > { %1913 = vmatprep.subr.bf16.mxu1 %v2995_v53  ;;  %v3031_v53 = vld [vmem:[%s3922_s11 + $0x68] sm:$0xff]  }
 0xa01   : > { %v1504_v46 = vsel %vm1503_vm5, %v1500_v45, %v2921_v37  ;;  %v1505_v47 = vsel %vm1503_vm5, %v1501_v39, %v2922_v36  ;;  %v2999_v36 = vld [vmem:[%s3920_s9 + $0xc0] ss:$16 sps:$4 sm:$0xff]   ;;  %v3001_v37 = vld [vmem:[%s3920_s9 + $0xc4] ss:$16 sps:$4 sm:$0xff]   ;;  %v3004_v45 = vld [vmem:[%s3920_s9 + $0xcc] ss:$16 sps:$4 sm:$0xff]  }
 0xa02   : > { %v1507_v50 = vpack.c.bf16 %v1505_v47, %v1504_v46  ;;  %v3007_v39 = vld [vmem:[%s3920_s9 + $0xe4] ss:$16 sps:$4 sm:$0xff]   ;;  %v3010_v46 = vld [vmem:[%s3920_s9 + $0xec] ss:$16 sps:$4 sm:$0xff]   ;;  %v3005_v47 = vld [vmem:[%s3920_s9 + $0xe0] ss:$16 sps:$4 sm:$0xff]  }
 0xa03   : > { %1914 = vmatpush1.bf16.msra.mxu1 %v2993_v32  ;;  %v3033_v32 = vld [vmem:[%s3922_s11 + $0x28] sm:$0xff]  }
 0xa04   : > { %2880 = vmatprep.mubr.bf16.mxu0 %v1507_v50  ;;  %1915 = vmatprep.subr.bf16.mxu1 %v3001_v37  ;;  %v3008_v50 = vld [vmem:[%s3920_s9 + $0xe8] ss:$16 sps:$4 sm:$0xff]   ;;  %v3036_v37 = vld [vmem:[%s3922_s11 + $0xf0] sm:$0xff]  }
 0xa05   : > { %2881 = vmatmul.mubr.bf16.vlgmr.msra.gmra.mrb[20].mxu0 %v1508_v51 }
 0xa06   : > { %1986 = vmatprep.mubr.bf16.mxu0 %v3138_v35  ;;  %1955 = vmatpush1.bf16.msra.mxu0 %v2966_v4 }
 0xa07   : > { %1956 = vmatprep.subr.bf16.mxu0 %v2974_v9  ;;  %1916 = vmatpush1.bf16.msra.mxu1 %v2999_v36  ;;  %v3035_v36 = vld [vmem:[%s3922_s11 + $0x70] sm:$0xff]  }
 0xa08   : > { %1917 = vmatprep.subr.bf16.mxu1 %v3007_v39  ;;  %v3039_v39 = vld [vmem:[%s3922_s11 + $0x78] sm:$0xff]  }
 0xa0a   : > { %1957 = vmatpush1.bf16.msra.mxu0 %v2972_v11 }
 0xa0b   : > { %1958 = vmatprep.subr.bf16.mxu0 %v2980_v20  ;;  %1918 = vmatpush1.bf16.msra.mxu1 %v3005_v47  ;;  %v3020_v20 = vld [vmem:[%s3922_s11 + $0xd0] sm:$0xff]   ;;  %v3041_v47 = vld [vmem:[%s3922_s11 + $0x38] sm:$0xff]  }
 0xa0e   : > { %1959 = vmatpush1.bf16.msra.mxu0 %v2978_v22  ;;  %v3022_v22 = vld [vmem:[%s3922_s11 + $0x90] sm:$0xff]  }
 0xa0f   : > { %1960 = vmatprep.subr.bf16.mxu0 %v2986_v23  ;;  %v3024_v23 = vld [vmem:[%s3922_s11 + $0xd8] sm:$0xff]  }
 0xa12   : > { %1961 = vmatpush1.bf16.msra.mxu0 %v2984_v25  ;;  %v3026_v25 = vld [vmem:[%s3922_s11 + $0x98] sm:$0xff]  }
 0xa13   : > { %1962 = vmatprep.subr.bf16.mxu0 %v2992_v30  ;;  %v3028_v30 = vld [vmem:[%s3922_s11 + $0xe0] sm:$0xff]  }
 0xa16   : > { %1963 = vmatpush1.bf16.msra.mxu0 %v2990_v49  ;;  %v3030_v49 = vld [vmem:[%s3922_s11 + $0xa0] sm:$0xff]  }
 0xa17   : > { %1964 = vmatprep.subr.bf16.mxu0 %v2998_v54  ;;  %v3032_v54 = vld [vmem:[%s3922_s11 + $0xe8] sm:$0xff]  }
 0xa1a   : > { %1965 = vmatpush1.bf16.msra.mxu0 %v2996_v34  ;;  %v3034_v34 = vld [vmem:[%s3922_s11 + $0xa8] sm:$0xff]  }
 0xa1b   : > { %1966 = vmatprep.subr.bf16.mxu0 %v3004_v45  ;;  %v3038_v45 = vld [vmem:[%s3922_s11 + $0xb0] sm:$0xff]  }
 0xa1e   : > { %1967 = vmatpush1.bf16.msra.mxu0 %v3002_v41  ;;  %v3037_v41 = vld [vmem:[%s3922_s11 + $0x30] sm:$0xff]  }
 0xa1f   : > { %1968 = vmatprep.subr.bf16.mxu0 %v3010_v46  ;;  %v3040_v46 = vld [vmem:[%s3922_s11 + $0xf8] sm:$0xff]  }
 0xa22   : > { %1969 = vmatpush1.bf16.msra.mxu0 %v3008_v50  ;;  %v3042_v50 = vld [vmem:[%s3922_s11 + $0xb8] sm:$0xff]  }
 0xad8   : > { %v2882_v42 = vpop.f32.mrb[20].mxu0 }
 0xad9   : > { %v1607_v52 = vpop.f32.mrb[21].mxu0  ;;  %v1623_v58 = vadd.f32 %v3128_v33, %v2882_v42 }
 0xada   : > { %v1621_v56 = vadd.f32 %v3127_v55, %v1607_v52  ;;  %v2883_v29 = vpop.f32.mrb[22].mxu0 }
 0xadb   : > { %v1610_v57 = vpop.f32.mrb[23].mxu0  ;;  %v3561_v63 = vadd.f32 %v2602_v40, %v1623_v58 }
 0xadc   : > { %v3555_v59 = vadd.f32 %v2602_v40, %v1621_v56  ;;  %v1622_v61 = vadd.f32 %v3129_v60, %v1610_v57 }
 0xade   : > { %v3558_v62 = vadd.f32 %v2602_v40, %v1622_v61  ;;  %1636 = vadd.xlane.f32.xlu0 %v3555_v59  ;;  %v2603_v61 = vld [vmem:[%s3918_s7] ss:$0 sm:$0xff] }
 0xae0   : > { %1638 = vadd.xlane.f32.xlu1 %v3558_v62 }
 0xae2   : > { %1640 = vadd.xlane.f32.xlu0 %v3561_v63 }
 0xb6b   : > { %v1637_v12 = vpop.xlane.xlu0 %1636 }
 0xb6c   : > { %v1642_v13 = vmul.f32 0.0078125, %v1637_v12 }
 0xb6d   : > { %v1639_v14 = vpop.xlane.xlu1 %1638 }
 0xb6e   : > { %v3590_v15 = vsub.f32 %v3555_v59, %v1642_v13  ;;  %v1643_v27 = vmul.f32 0.0078125, %v1639_v14 }
 0xb6f   : > { %v1641_v16 = vpop.xlane.xlu0 %1640 }
 0xb70   : > { %v3593_v38 = vsub.f32 %v3558_v62, %v1643_v27  ;;  %v1644_v28 = vmul.f32 0.0078125, %v1641_v16  ;;  %v1648_v44 = vmul.f32 %v3590_v15, %v3590_v15  ;;  %v3011_v16 = vld [vmem:[%s3922_s11 + $0x40] sm:$0xff]  }
 0xb71   : > { %2724 = vmatprep.subr.bf16.mxu1 %v3011_v16 }
 0xb72   : > { %v3598_v17 = vsub.f32 %v3561_v63, %v1644_v28  ;;  %1651 = vadd.xlane.f32.xlu0 %v1648_v44  ;;  %v1649_v18 = vmul.f32 %v3593_v38, %v3593_v38  ;;  %v3013_v28 = vld [vmem:[%s3922_s11] sm:$0xff]   ;;  %v3015_v44 = vld [vmem:[%s3922_s11 + $0x48] sm:$0xff]  }
 0xb74   : > { %v1650_v43 = vmul.f32 %v3598_v17, %v3598_v17 }
 0xb76   : > { %1655 = vadd.xlane.f32.xlu1 %v1650_v43  ;;  %1653 = vadd.xlane.f32.xlu0 %v1649_v18  ;;  %v3017_v43 = vld [vmem:[%s3922_s11 + $0x8] sm:$0xff]  }
 0xb77   : > { %v3018_v18 = vld [vmem:[%s3922_s11 + $0x88] sm:$0xff]  }
 0xbff   : > { %v1652_v51 = vpop.xlane.xlu0 %1651 }
 0xc00   : > { %v1657_v42 = vmul.f32 0.0078125, %v1652_v51  ;;  %v1721_v51 = vld [vmem:[%s3921_s10] sm:$0xf] }
 0xc02   : > { %v1660_v40 = vadd.f32 1e-12, %v1657_v42  ;;  %v1737_v42 = vsub.s32 3, %v3328_v2 }
 0xc03   : > { %v1654_v52 = vpop.xlane.xlu0 %1653  ;;  %v1656_v55 = vpop.xlane.xlu1 %1655 }
 0xc04   : > { %3097 = vrsqrt.f32 %v1660_v40  ;;  %v1658_v56 = vmul.f32 0.0078125, %v1654_v52  ;;  %v1659_v29 = vmul.f32 0.0078125, %v1656_v55  ;;  %v3789_v40 = vrot.slane %v1721_v51, %v540_v3 }
 0xc05   : > { %v3793_v52 = vrot.slane %v1721_v51, %v548_v7  ;;  %v3797_v55 = vrot.slane %v1721_v51, %v544_v5 }
 0xc06   : > { %v1661_v57 = vadd.f32 1e-12, %v1658_v56  ;;  %v1662_v33 = vadd.f32 1e-12, %v1659_v29  ;;  %v3799_v56 = vrot.slane %v1721_v51, %v1737_v42 }
 0xc08   : > { %3099 = vrsqrt.f32 %v1661_v57 }
 0xc09   : > { %3101 = vrsqrt.f32 %v1662_v33 }
 0xc0e   : > { %v3098_v58 = vpop.eup %3097 }
 0xc0f   : > { %v1666_v60 = vmul.f32 %v3098_v58, %v3590_v15 }
 0xc11   : > { %v1675_v6 = vmul.f32 %v2603_v61, %v1666_v60 }
 0xc12   : > { %v3100_v0 = vpop.eup %3099 }
 0xc13   : > { %v3102_v1 = vpop.eup %3101  ;;  %v1667_v4 = vmul.f32 %v3100_v0, %v3593_v38  ;;  %v1684_v11 = vadd.f32 %v2604_v8, %v1675_v6  ;;  %v3012_v38 = vld [vmem:[%s3922_s11 + $0xc0] sm:$0xff]  }
 0xc14   : > { %v1668_v10 = vmul.f32 %v3102_v1, %v3598_v17  ;;  %2752 = vmatprep.subr.bf16.mxu0 %v3012_v38  ;;  %v3016_v17 = vld [vmem:[%s3922_s11 + $0xc8] sm:$0xff]  }
 0xc15   : > { %v1676_v9 = vmul.f32 %v2603_v61, %v1667_v4 }
 0xc16   : > { %v1677_v14 = vmul.f32 %v2603_v61, %v1668_v10 }
 0xc17   : > { %v1685_v12 = vadd.f32 %v2604_v8, %v1676_v9 }
 0xc18   : > { %v1686_v15 = vadd.f32 %v2604_v8, %v1677_v14 }
 0xc19   : > { %v1687_v13 = vpack.c.bf16 %v1685_v12, %v1684_v11 }
 0xc1a   : > { %v1688_v27 = vpack.c.bf16 %v1686_v15, %v1686_v15 }
 0xc1b   : > { %1936 = vmatmul.mubr.bf16.vlgmr.msra.gmra.mrb[24].mxu1 %v1687_v13  ;;  %1987 = vmatmul.mubr.bf16.vlgmr.msra.gmra.mrb[24].mxu0 %v1687_v13 }
 0xc1c   : > { %1945 = vmatprep.mubr.bf16.mxu1 %v3138_v35  ;;  %1996 = vmatprep.mubr.bf16.mxu0 %v3138_v35  ;;  %v3014_v35 = vld [vmem:[%s3922_s11 + $0x80] sm:$0xff]  }
 0xc1d   : > { %2725 = vmatpush3.bf16.msra.mxu1 %v3013_v28  ;;  %2753 = vmatpush3.bf16.msra.mxu0 %v3014_v35 }
 0xc1e   : > { %2726 = vmatprep.subr.bf16.mxu1 %v3015_v44  ;;  %2754 = vmatprep.subr.bf16.mxu0 %v3016_v17 }
 0xc21   : > { %2727 = vmatpush3.bf16.msra.mxu1 %v3017_v43  ;;  %2755 = vmatpush3.bf16.msra.mxu0 %v3018_v18 }
 0xc22   : > { %2728 = vmatprep.subr.bf16.mxu1 %v3019_v19  ;;  %2756 = vmatprep.subr.bf16.mxu0 %v3020_v20 }
 0xc23   : > { %1946 = vmatmul.mubr.bf16.gmra.mrb[28].mxu1 %v1688_v27  ;;  %1997 = vmatmul.mubr.bf16.gmra.mrb[28].mxu0 %v1688_v27 }
 0xc25   : > { %2729 = vmatpush3.bf16.msra.mxu1 %v3021_v21  ;;  %2757 = vmatpush3.bf16.msra.mxu0 %v3022_v22 }
 0xc26   : > { %2730 = vmatprep.subr.bf16.mxu1 %v3023_v48  ;;  %2758 = vmatprep.subr.bf16.mxu0 %v3024_v23 }
 0xc29   : > { %2731 = vmatpush3.bf16.msra.mxu1 %v3025_v24  ;;  %2759 = vmatpush3.bf16.msra.mxu0 %v3026_v25 }
 0xc2a   : > { %2732 = vmatprep.subr.bf16.mxu1 %v3027_v26  ;;  %2760 = vmatprep.subr.bf16.mxu0 %v3028_v30 }
 0xc2d   : > { %2733 = vmatpush3.bf16.msra.mxu1 %v3029_v31  ;;  %2761 = vmatpush3.bf16.msra.mxu0 %v3030_v49 }
 0xc2e   : > { %2734 = vmatprep.subr.bf16.mxu1 %v3031_v53  ;;  %2762 = vmatprep.subr.bf16.mxu0 %v3032_v54 }
 0xc31   : > { %2735 = vmatpush3.bf16.msra.mxu1 %v3033_v32  ;;  %2763 = vmatpush3.bf16.msra.mxu0 %v3034_v34 }
 0xc32   : > { %2736 = vmatprep.subr.bf16.mxu1 %v3035_v36  ;;  %2764 = vmatprep.subr.bf16.mxu0 %v3036_v37 }
 0xc35   : > { %2737 = vmatpush3.bf16.msra.mxu1 %v3037_v41  ;;  %2765 = vmatpush3.bf16.msra.mxu0 %v3038_v45 }
 0xc36   : > { %2738 = vmatprep.subr.bf16.mxu1 %v3039_v39  ;;  %2766 = vmatprep.subr.bf16.mxu0 %v3040_v46 }
 0xc39   : > { %2739 = vmatpush3.bf16.msra.mxu1 %v3041_v47  ;;  %2767 = vmatpush3.bf16.msra.mxu0 %v3042_v50 }
 0xcee   : > { %v1937_v29 = vpop.f32.mrb[24].mxu1  ;;  %v1988_v57 = vpop.f32.mrb[24].mxu0 }
 0xcef   : > { %v3802_v33 = vadd.f32 %v1937_v29, %v3789_v40  ;;  %v3805_v58 = vadd.f32 %v1988_v57, %v3793_v52  ;;  %v1939_v3 = vpop.f32.mrb[25].mxu1  ;;  %v1990_v60 = vpop.f32.mrb[25].mxu0 }
 0xcf0   : > { %v3808_v61 = vadd.f32 %v1939_v3, %v3797_v55  ;;  %v3811_v7 = vadd.f32 %v1990_v60, %v3799_v56  ;;  %v1941_v2 = vpop.f32.mrb[26].mxu1  ;;  %v1992_v5 = vpop.f32.mrb[26].mxu0 }
 0xcf1   : > { %v2005_v0 = vmul.f32 %v3802_v33, %v3802_v33  ;;  %v2007_v1 = vmul.f32 %v3805_v58, %v3805_v58  ;;  %v3818_v4 = vadd.f32 %v1941_v2, %v3789_v40  ;;  %v3821_v6 = vadd.f32 %v1992_v5, %v3793_v52  ;;  %v1943_v8 = vpop.f32.mrb[27].mxu1  ;;  %v1994_v9 = vpop.f32.mrb[27].mxu0 }
 0xcf2   : > { %v2006_v10 = vmul.f32 %v3808_v61, %v3808_v61  ;;  %v2008_v11 = vmul.f32 %v3811_v7, %v3811_v7  ;;  %v3828_v12 = vadd.f32 %v1943_v8, %v3797_v55  ;;  %v3831_v13 = vadd.f32 %v1994_v9, %v3799_v56 }
 0xcf3   : > { %v2017_v14 = vmul.f32 %v2005_v0, %v3802_v33  ;;  %v2019_v15 = vmul.f32 %v2007_v1, %v3805_v58  ;;  %v2009_v27 = vmul.f32 %v3818_v4, %v3818_v4  ;;  %v2011_v16 = vmul.f32 %v3821_v6, %v3821_v6 }
 0xcf4   : > { %v2018_v38 = vmul.f32 %v2006_v10, %v3808_v61  ;;  %v2020_v28 = vmul.f32 %v2008_v11, %v3811_v7  ;;  %v2010_v35 = vmul.f32 %v3828_v12, %v3828_v12  ;;  %v2012_v44 = vmul.f32 %v3831_v13, %v3831_v13 }
 0xcf5   : > { %v2029_v17 = vmul.f32 0.044715, %v2017_v14  ;;  %v2031_v43 = vmul.f32 0.044715, %v2019_v15  ;;  %v2021_v18 = vmul.f32 %v2009_v27, %v3818_v4  ;;  %v2023_v19 = vmul.f32 %v2011_v16, %v3821_v6 }
 0xcf6   : > { %v2030_v20 = vmul.f32 0.044715, %v2018_v38  ;;  %v2032_v21 = vmul.f32 0.044715, %v2020_v28  ;;  %v2022_v22 = vmul.f32 %v2010_v35, %v3828_v12  ;;  %v2024_v48 = vmul.f32 %v2012_v44, %v3831_v13  ;;  %v1947_v23 = vpop.f32.mrb[28].mxu1  ;;  %v1998_v24 = vpop.f32.mrb[28].mxu0 }
 0xcf7   : > { %v2041_v25 = vadd.f32 %v2029_v17, %v3802_v33  ;;  %v2043_v26 = vadd.f32 %v2031_v43, %v3805_v58  ;;  %v2033_v30 = vmul.f32 0.044715, %v2021_v18  ;;  %v2035_v31 = vmul.f32 0.044715, %v2023_v19  ;;  %v1949_v49 = vpop.f32.mrb[29].mxu1  ;;  %v2000_v53 = vpop.f32.mrb[29].mxu0 }
 0xcf8   : > { %v2042_v54 = vadd.f32 %v2030_v20, %v3808_v61  ;;  %v2044_v32 = vadd.f32 %v2032_v21, %v3811_v7  ;;  %v2034_v34 = vmul.f32 0.044715, %v2022_v22  ;;  %v2036_v36 = vmul.f32 0.044715, %v2024_v48  ;;  %v1951_v37 = vpop.f32.mrb[30].mxu1  ;;  %v2002_v41 = vpop.f32.mrb[30].mxu0 }
 0xcf9   : > { %v2053_v45 = vmul.f32 0.7978846, %v2041_v25  ;;  %v2055_v39 = vmul.f32 0.7978846, %v2043_v26  ;;  %v2045_v46 = vadd.f32 %v2033_v30, %v3818_v4  ;;  %v2047_v47 = vadd.f32 %v2035_v31, %v3821_v6  ;;  %v1952_v50 = vpop.f32.mrb[31].mxu1  ;;  %v2003_v51 = vpop.f32.mrb[31].mxu0 }
 0xcfa   : > { %v2054_v42 = vmul.f32 0.7978846, %v2042_v54  ;;  %v2056_v29 = vmul.f32 0.7978846, %v2044_v32  ;;  %v2046_v57 = vadd.f32 %v2034_v34, %v3828_v12  ;;  %v2048_v3 = vadd.f32 %v2036_v36, %v3831_v13 }
 0xcfb   : > { %3103 = vtanh.f32 %v2053_v45  ;;  %v2057_v60 = vmul.f32 0.7978846, %v2045_v46  ;;  %v3858_v2 = vadd.f32 %v1947_v23, %v3789_v40  ;;  %v2059_v5 = vmul.f32 0.7978846, %v2047_v47 }
 0xcfc   : > { %3105 = vtanh.f32 %v2055_v39  ;;  %v2058_v0 = vmul.f32 0.7978846, %v2046_v57  ;;  %v3861_v1 = vadd.f32 %v1998_v24, %v3793_v52  ;;  %v3866_v9 = vadd.f32 %v1949_v49, %v3797_v55 }
 0xcfd   : > { %3107 = vtanh.f32 %v2054_v42  ;;  %v2013_v8 = vmul.f32 %v3858_v2, %v3858_v2  ;;  %v3869_v10 = vadd.f32 %v2000_v53, %v3799_v56  ;;  %v2060_v11 = vmul.f32 0.7978846, %v2048_v3 }
 0xcfe   : > { %3109 = vtanh.f32 %v2056_v29  ;;  %v2015_v40 = vmul.f32 %v3861_v1, %v3861_v1  ;;  %v2014_v52 = vmul.f32 %v3866_v9, %v3866_v9 }
 0xcff   : > { %3111 = vtanh.f32 %v2057_v60  ;;  %v2025_v14 = vmul.f32 %v2013_v8, %v3858_v2  ;;  %v2016_v15 = vmul.f32 %v3869_v10, %v3869_v10 }
 0xd00   : > { %3113 = vtanh.f32 %v2059_v5  ;;  %v2027_v55 = vmul.f32 %v2015_v40, %v3861_v1  ;;  %v2026_v27 = vmul.f32 %v2014_v52, %v3866_v9 }
 0xd01   : > { %3115 = vtanh.f32 %v2058_v0  ;;  %v2037_v56 = vmul.f32 0.044715, %v2025_v14  ;;  %v2028_v16 = vmul.f32 %v2016_v15, %v3869_v10 }
 0xd02   : > { %3117 = vtanh.f32 %v2060_v11  ;;  %v2039_v38 = vmul.f32 0.044715, %v2027_v55  ;;  %v2038_v35 = vmul.f32 0.044715, %v2026_v27 }
 0xd03   : > { %v2049_v28 = vadd.f32 %v2037_v56, %v3858_v2  ;;  %v2040_v44 = vmul.f32 0.044715, %v2028_v16 }
 0xd04   : > { %v2051_v17 = vadd.f32 %v2039_v38, %v3861_v1  ;;  %v2050_v19 = vadd.f32 %v2038_v35, %v3866_v9 }
 0xd05   : > { %v3104_v43 = vpop.eup %3103  ;;  %v2061_v18 = vmul.f32 0.7978846, %v2049_v28  ;;  %v2052_v20 = vadd.f32 %v2040_v44, %v3869_v10 }
 0xd06   : > { %v3106_v21 = vpop.eup %3105  ;;  %v2077_v22 = vadd.f32 1.0, %v3104_v43  ;;  %v2063_v48 = vmul.f32 0.7978846, %v2051_v17  ;;  %v2062_v25 = vmul.f32 0.7978846, %v2050_v19 }
 0xd07   : > { %v3108_v23 = vpop.eup %3107  ;;  %v2079_v24 = vadd.f32 1.0, %v3106_v21  ;;  %3119 = vtanh.f32 %v2061_v18  ;;  %v2064_v26 = vmul.f32 0.7978846, %v2052_v20 }
 0xd08   : > { %v3110_v30 = vpop.eup %3109  ;;  %3121 = vtanh.f32 %v2063_v48  ;;  %v2078_v31 = vadd.f32 1.0, %v3108_v23  ;;  %v2089_v32 = vmul.f32 0.5, %v2077_v22 }
 0xd09   : > { %v3112_v49 = vpop.eup %3111  ;;  %3123 = vtanh.f32 %v2062_v25  ;;  %v2080_v53 = vadd.f32 1.0, %v3110_v30  ;;  %v2091_v37 = vmul.f32 0.5, %v2079_v24 }
 0xd0a   : > { %v3114_v54 = vpop.eup %3113  ;;  %v2081_v34 = vadd.f32 1.0, %v3112_v49  ;;  %3125 = vtanh.f32 %v2064_v26  ;;  %v2090_v47 = vmul.f32 0.5, %v2078_v31  ;;  %v2101_v29 = vmul.f32 %v2089_v32, %v3802_v33 }
 0xd0b   : > { %v3116_v36 = vpop.eup %3115  ;;  %v2083_v41 = vadd.f32 1.0, %v3114_v54  ;;  %v2092_v42 = vmul.f32 0.5, %v2080_v53  ;;  %v2103_v60 = vmul.f32 %v2091_v37, %v3805_v58  ;;  %v2669_v53 = vld [vmem:[%s3923_s12] ss:$0 sm:$0xff] }
 0xd0c   : > { %v3118_v45 = vpop.eup %3117  ;;  %v2093_v39 = vmul.f32 0.5, %v2081_v34  ;;  %v2082_v46 = vadd.f32 1.0, %v3116_v36  ;;  %v2102_v11 = vmul.f32 %v2090_v47, %v3808_v61 }
 0xd0d   : > { %v2095_v50 = vmul.f32 0.5, %v2083_v41  ;;  %v2084_v51 = vadd.f32 1.0, %v3118_v45  ;;  %v2104_v15 = vmul.f32 %v2092_v42, %v3811_v7 }
 0xd0e   : > { %v2105_v57 = vmul.f32 %v2093_v39, %v3818_v4  ;;  %v2094_v3 = vmul.f32 0.5, %v2082_v46 }
 0xd0f   : > { %v2107_v5 = vmul.f32 %v2095_v50, %v3821_v6  ;;  %v2096_v0 = vmul.f32 0.5, %v2084_v51 }
 0xd10   : > { %v2113_v8 = vpack.c.bf16 %v2105_v57, %v2101_v29  ;;  %v2106_v40 = vmul.f32 %v2094_v3, %v3828_v12 }
 0xd11   : > { %v3120_v14 = vpop.eup %3119  ;;  %v2115_v52 = vpack.c.bf16 %v2107_v5, %v2103_v60  ;;  %v2108_v55 = vmul.f32 %v2096_v0, %v3831_v13 }
 0xd12   : > { %v3122_v33 = vpop.eup %3121  ;;  %v2114_v56 = vpack.c.bf16 %v2106_v40, %v2102_v11  ;;  %v2085_v4 = vadd.f32 1.0, %v3120_v14 }
 0xd13   : > { %v3124_v27 = vpop.eup %3123  ;;  %v2116_v16 = vpack.c.bf16 %v2108_v55, %v2104_v15  ;;  %v2087_v58 = vadd.f32 1.0, %v3122_v33 }
 0xd14   : > { %v3126_v38 = vpop.eup %3125  ;;  %2409 = vmatprep.mubr.bf16.mxu1 %v2114_v56  ;;  %v2086_v6 = vadd.f32 1.0, %v3124_v27  ;;  %v2097_v28 = vmul.f32 0.5, %v2085_v4 }
 0xd15   : > { %2457 = vmatprep.mubr.bf16.mxu0 %v2116_v16  ;;  %2410 = vmatmul.mubr.bf16.vlgmr.msra.gmra.mrb[32].mxu1 %v2113_v8  ;;  %v2088_v61 = vadd.f32 1.0, %v3126_v38  ;;  %v2099_v12 = vmul.f32 0.5, %v2087_v58 }
 0xd16   : > { %2458 = vmatmul.mubr.bf16.vlgmr.msra.gmra.mrb[32].mxu0 %v2115_v52  ;;  %v2098_v35 = vmul.f32 0.5, %v2086_v6  ;;  %v2109_v7 = vmul.f32 %v2097_v28, %v3858_v2 }
 0xd17   : > { %v2100_v44 = vmul.f32 0.5, %v2088_v61  ;;  %v2111_v17 = vmul.f32 %v2099_v12, %v3861_v1 }
 0xd18   : > { %v2110_v13 = vmul.f32 %v2098_v35, %v3866_v9  ;;  %v2117_v20 = vpack.c.bf16 %v2109_v7, %v2109_v7 }
 0xd19   : > { %v2112_v43 = vmul.f32 %v2100_v44, %v3869_v10  ;;  %v2119_v21 = vpack.c.bf16 %v2111_v17, %v2111_v17 }
 0xd1a   : > { %v2118_v18 = vpack.c.bf16 %v2110_v13, %v2110_v13 }
 0xd1b   : > { %v2120_v19 = vpack.c.bf16 %v2112_v43, %v2112_v43 }
 0xd1c   : > { %2417 = vmatprep.mubr.bf16.mxu1 %v2118_v18 }
 0xd1d   : > { %2465 = vmatprep.mubr.bf16.mxu0 %v2120_v19  ;;  %2418 = vmatmul.mubr.bf16.gmra.mrb[36].mxu1 %v2117_v20 }
 0xd1e   : > { %2466 = vmatmul.mubr.bf16.gmra.mrb[36].mxu0 %v2119_v21 }
 0xde8   : > { %v2740_v22 = vpop.f32.mrb[32].mxu1 }
 0xde9   : > { %v2768_v48 = vpop.f32.mrb[32].mxu0  ;;  %v2741_v23 = vpop.f32.mrb[33].mxu1 }
 0xdea   : > { %v2742_v24 = vadd.f32 %v2741_v23, %v2740_v22  ;;  %v2769_v2 = vpop.f32.mrb[33].mxu0  ;;  %v2743_v25 = vpop.f32.mrb[34].mxu1 }
 0xdeb   : > { %v2770_v9 = vadd.f32 %v2769_v2, %v2768_v48  ;;  %v2771_v26 = vpop.f32.mrb[34].mxu0  ;;  %v2744_v1 = vpop.f32.mrb[35].mxu1 }
 0xdec   : > { %v2745_v30 = vadd.f32 %v2744_v1, %v2743_v25  ;;  %v2772_v10 = vpop.f32.mrb[35].mxu0 }
 0xded   : > { %v2460_v31 = vadd.f32 %v2770_v9, %v2742_v24  ;;  %v2773_v49 = vadd.f32 %v2772_v10, %v2771_v26 }
 0xdef   : > { %v2473_v54 = vadd.f32 %v2460_v31, %v3555_v59  ;;  %v2463_v32 = vadd.f32 %v2773_v49, %v2745_v30 }
 0xdf0   : > { %v2746_v34 = vpop.f32.mrb[36].mxu1 }
 0xdf1   : > { %v2483_v36 = vadd.f32 %v2669_v53, %v2473_v54  ;;  %v2474_v37 = vadd.f32 %v2463_v32, %v3558_v62  ;;  %v2774_v41 = vpop.f32.mrb[36].mxu0  ;;  %v2747_v45 = vpop.f32.mrb[37].mxu1 }
 0xdf2   : > { %v2748_v39 = vadd.f32 %v2747_v45, %v2746_v34  ;;  %v2775_v46 = vpop.f32.mrb[37].mxu0  ;;  %v2749_v47 = vpop.f32.mrb[38].mxu1 }
 0xdf3   : > { %2486 = vst [vmem:[%s442_s17] sm:$0xff] %v2483_v36  ;;  %v2484_v50 = vadd.f32 %v2669_v53, %v2474_v37  ;;  %v2776_v51 = vadd.f32 %v2775_v46, %v2774_v41  ;;  %v2777_v42 = vpop.f32.mrb[38].mxu0  ;;  %v2750_v59 = vpop.f32.mrb[39].mxu1 }
 0xdf4   : > { %v2778_v29 = vpop.f32.mrb[39].mxu0 }
 0xdf5   : > { %2487 = vst [vmem:[%s442_s17 + $0x8] sm:$0xff] %v2484_v50  ;;  %v2468_v57 = vadd.f32 %v2776_v51, %v2748_v39 }
 0xdf7   : > { %v2475_v3 = vadd.f32 %v2468_v57, %v3561_v63 }
 0xdf9   : > { %v2485_v60 = vadd.f32 %v2669_v53, %v2475_v3 }
 0xdfb   : > { %2488 = vst [vmem:[%s442_s17 + $0x10] sm:$0xff] %v2485_v60 }
 0xdfc PF: > { %s23_s25 = sadd.s32 1, %s3136_s25  }
 0xdfd   : > { %p20_p4 = scmp.ge.s32.totalorder %s23_s25, 4  }
 0xdff   :  { %22 = sbr.rel (!%p20_p4) target bundleno = 1 (0x1), region = 102 }

</bundles_post_ra>
